<compile_context>
chip_gen: v6e
topology: v6e:2x2x1
jax: 0.10.0
libtpu: 0.0.40
codegen_flags: <defaults>
</compile_context>

<pallas_src>
import functools

import jax
import jax.numpy as jnp
from jax.experimental import pallas as pl
from jax.experimental.pallas import tpu as pltpu


def _fla_kernel(x_ref, pos_ref, mask_ref, wqkv_ref, wproj_ref, vecs_ref,
                hmask_ref, smask_ref, o_ref, *, focusing_factor):
    """One grid step = bt "super-sets" (G lane-packed sets each) of focused linear attention."""
    bt, Np, GC = x_ref.shape
    R = bt * Np
    eps = 1e-6
    f32 = jnp.float32

    x = x_ref[...].reshape(R, GC)
    pos = pos_ref[...].reshape(R, GC).astype(f32)
    m = mask_ref[...].reshape(R, GC).astype(f32)

    vecs = vecs_ref[...]                                   # (8, GC) f32 slab
    b_q, b_k, b_v = vecs[0:1, :], vecs[1:2, :], vecs[2:3, :]
    inv_scale, b_proj = vecs[3:4, :], vecs[4:5, :]

    # Fused qkv projection; the three output slices are 128-lane aligned.
    qkv = jnp.dot(x, wqkv_ref[...], preferred_element_type=f32)
    q = qkv[:, 0:GC] + b_q + pos
    k = qkv[:, GC:2 * GC] + b_k + pos
    v = qkv[:, 2 * GC:3 * GC] + b_v

    # Focused kernel feature map (f32 elementwise on VPU / EUP).
    q = (jnp.maximum(q, 0.0) + eps) * inv_scale            # relu + eps, / softplus(scale)
    k = (jnp.maximum(k, 0.0) + eps) * inv_scale

    smask = smask_ref[...]                                 # (GC, GC) same-set mask
    hmask = hmask_ref[...]                                 # (GC, GC) same-set & same-head mask

    # Per-(row, set) squared norms on the MXU, broadcast across each set's lanes.
    q2 = jnp.dot(q * q, smask, preferred_element_type=f32)
    k2 = jnp.dot(k * k, smask, preferred_element_type=f32)
    qp = q ** focusing_factor                              # static int power -> multiplies
    kp = k ** focusing_factor
    qp2 = jnp.dot(qp * qp, smask, preferred_element_type=f32)
    kp2 = jnp.dot(kp * kp, smask, preferred_element_type=f32)

    q = qp * (jnp.sqrt(q2) * jax.lax.rsqrt(qp2))
    k = kp * (jnp.sqrt(k2) * jax.lax.rsqrt(kp2)) * m       # mask folded into k

    # Batched (over bt super-sets) linear-attention contractions; the set/head
    # structure is enforced by the block-diagonal hmask, so everything stays a
    # lane-dense dot_general (no per-set Python loop, no concatenate).
    q3 = q.reshape(bt, Np, GC)
    k3 = k.reshape(bt, Np, GC)
    v3 = v.reshape(bt, Np, GC)

    ksum = jnp.sum(k3, axis=1, keepdims=True)                              # (bt, 1, GC)
    denom = jnp.dot((q3 * ksum).reshape(R, GC), hmask,
                    preferred_element_type=f32) + eps                      # (R, GC)
    z0 = pl.reciprocal(denom, approx=True)                 # EUP seed (free slot)
    z = z0 * (2.0 - denom * z0)                            # one Newton step -> ~f32 exact

    kv = jnp.einsum('bjc,bjd->bcd', k3, v3,
                    preferred_element_type=f32) * hmask[None]              # (bt, GC, GC)
    attn = jnp.einsum('bic,bcd->bid', q3, kv,
                      preferred_element_type=f32).reshape(R, GC) * z       # (R, GC)

    # Fused output projection (proj_drop has p=0 -> identity); lane-dense store.
    y = jnp.dot(attn.astype(wproj_ref.dtype), wproj_ref[...],
                preferred_element_type=f32) + b_proj
    o_ref[...] = y.reshape(bt, Np, GC).astype(o_ref.dtype)


def focused_linear_attention(x, pos, mask, voxel_inds, num_coords, params,
                             num_heads, focusing_factor=3,
                             compute_dtype=jnp.float32, rows_per_step=1024):
    B, N, C = x.shape
    assert C % num_heads == 0
    hd = C // num_heads

    # ---- lane-packing factor: G sets share one 128-lane group --------------
    G = 128 // C if (C < 128 and 128 % C == 0) else 1
    GC = G * C

    # ---- pad rows-per-set to a sublane multiple of 8 (padded rows: mask=0) --
    Np = ((N + 7) // 8) * 8
    if Np != N:
        x = jnp.pad(x, ((0, 0), (0, Np - N), (0, 0)))
        pos = jnp.pad(pos, ((0, 0), (0, Np - N), (0, 0)))
        mask = jnp.pad(mask, ((0, 0), (0, Np - N)))

    # ---- bt (super-sets per grid step): amortize step overhead, grid >= 2 ---
    Bg_min = -(-B // G)
    bt = max(1, rows_per_step // max(Np, 1))
    bt = min(bt, Bg_min // 2) if Bg_min >= 2 else 1        # v7x: 2 TCs on the parallel axis
    bt = max(1, bt)
    Bg = -(-Bg_min // bt) * bt
    Bp = Bg * G

    if Bp != B:
        pad = Bp - B
        x = jnp.concatenate([x, jnp.zeros((pad, Np, C), x.dtype)], axis=0)
        pos = jnp.concatenate([pos, jnp.zeros((pad, Np, C), pos.dtype)], axis=0)
        mask = jnp.concatenate([mask, jnp.zeros((pad, Np), mask.dtype)], axis=0)

    # ---- pack G sets along the lane axis ------------------------------------
    def pack(a):  # (Bp, Np, C) -> (Bg, Np, G*C), set g occupies lanes [g*C, (g+1)*C)
        return (a.reshape(Bg, G, Np, C).transpose(0, 2, 1, 3)
                 .reshape(Bg, Np, GC).astype(compute_dtype))

    xp = pack(x)
    posp = pack(pos)
    maskp = pack(jnp.broadcast_to(mask[:, :, None], (Bp, Np, C)))

    # ---- block-diagonal weights (same per-set weight on every diagonal block)
    w_qkv, b_qkv = params["w_qkv"], params["b_qkv"]          # (C, 3C), (3C,)
    eye_g = jnp.eye(G, dtype=jnp.float32)

    def blockdiag(w):  # (C, C) -> (GC, GC)
        return jnp.kron(eye_g, w.astype(jnp.float32))

    wqkv_b = jnp.concatenate(
        [blockdiag(w_qkv[:, 0:C]), blockdiag(w_qkv[:, C:2 * C]),
         blockdiag(w_qkv[:, 2 * C:3 * C])], axis=1).astype(compute_dtype)   # (GC, 3GC)
    wproj_b = blockdiag(params["w_proj"]).astype(compute_dtype)             # (GC, GC)

    # ---- one (8, GC) slab for all per-lane vectors ---------------------------
    inv_scale = (1.0 / jax.nn.softplus(params["scale"])).reshape(-1)        # (C,)
    vec_rows = jnp.stack([
        jnp.tile(b_qkv[0:C], G), jnp.tile(b_qkv[C:2 * C], G),
        jnp.tile(b_qkv[2 * C:3 * C], G), jnp.tile(inv_scale, G),
        jnp.tile(params["b_proj"], G)]).astype(jnp.float32)                 # (5, GC)
    vecs = jnp.zeros((8, GC), jnp.float32).at[:5].set(vec_rows)

    # ---- set / set+head block-diagonal masks over the packed lane axis -------
    lane = jnp.arange(GC, dtype=jnp.int32)
    set_id = lane // C
    head_id = (lane % C) // hd
    smask = (set_id[:, None] == set_id[None, :]).astype(jnp.float32)
    hmask = smask * (head_id[:, None] == head_id[None, :]).astype(jnp.float32)

    kernel = functools.partial(_fla_kernel, focusing_factor=focusing_factor)

    out = pl.pallas_call(
        kernel,
        out_shape=jax.ShapeDtypeStruct((Bg, Np, GC), jnp.float32),
        grid_spec=pltpu.PrefetchScalarGridSpec(
            num_scalar_prefetch=0,
            grid=(Bg // bt,),
            in_specs=[
                pl.BlockSpec((bt, Np, GC), lambda i: (i, 0, 0)),    # x (lane-packed)
                pl.BlockSpec((bt, Np, GC), lambda i: (i, 0, 0)),    # pos (lane-packed)
                pl.BlockSpec((bt, Np, GC), lambda i: (i, 0, 0)),    # mask (lane-packed)
                pl.BlockSpec((GC, 3 * GC), lambda i: (0, 0)),       # W_qkv block-diag
                pl.BlockSpec((GC, GC), lambda i: (0, 0)),           # W_proj block-diag
                pl.BlockSpec((8, GC), lambda i: (0, 0)),            # bias / scale slab
                pl.BlockSpec((GC, GC), lambda i: (0, 0)),           # set+head mask
                pl.BlockSpec((GC, GC), lambda i: (0, 0)),           # set mask
            ],
            out_specs=pl.BlockSpec((bt, Np, GC), lambda i: (i, 0, 0)),
        ),
        compiler_params=pltpu.CompilerParams(dimension_semantics=("parallel",)),
    )(xp, posp, maskp, wqkv_b, wproj_b, vecs, hmask, smask)

    # ---- unpack lanes -> sets, drop padding, apply the scatter permutation ----
    out = (out.reshape(Bg, Np, G, C).transpose(0, 2, 1, 3)
              .reshape(Bp, Np, C)[:B, :N, :].reshape(B * N, C))

    # Matches torch: perm.scatter_(0, flatten_inds, arange); the row-wise
    # projection is already applied inside the kernel (commutes with the perm).
    flatten_inds = voxel_inds.reshape(-1)
    arange = jnp.arange(flatten_inds.shape[0], dtype=flatten_inds.dtype)
    perm = jnp.zeros((num_coords,), dtype=flatten_inds.dtype).at[flatten_inds].set(arange)
    return out[perm]


def _reference(x, pos, mask, voxel_inds, num_coords, params, num_heads, focusing_factor=3):
    """Pure-JAX mirror of the PyTorch forward for validation."""
    B, N, C = x.shape
    hd = C // num_heads
    eps = 1e-6
    qkv = jnp.einsum("bnc,cd->bnd", x, params["w_qkv"]) + params["b_qkv"]
    q, k, v = qkv[..., :C], qkv[..., C:2 * C], qkv[..., 2 * C:]
    q = jnp.maximum(q + pos, 0.0) + eps
    k = jnp.maximum(k + pos, 0.0) + eps
    scale = jax.nn.softplus(params["scale"])
    q, k = q / scale, k / scale
    qn = jnp.linalg.norm(q, axis=-1, keepdims=True)
    kn = jnp.linalg.norm(k, axis=-1, keepdims=True)
    q, k = q ** focusing_factor, k ** focusing_factor
    q = q / jnp.linalg.norm(q, axis=-1, keepdims=True) * qn
    k = k / jnp.linalg.norm(k, axis=-1, keepdims=True) * kn * mask[:, :, None]
    qh = q.reshape(B, N, num_heads, hd).transpose(0, 2, 1, 3).reshape(B * num_heads, N, hd)
    kh = k.reshape(B, N, num_heads, hd).transpose(0, 2, 1, 3).reshape(B * num_heads, N, hd)
    vh = v.reshape(B, N, num_heads, hd).transpose(0, 2, 1, 3).reshape(B * num_heads, N, hd)
    z = 1.0 / (jnp.einsum("bic,bc->bi", qh, kh.sum(axis=1)) + eps)
    kv = jnp.einsum("bjc,bjd->bcd", kh, vh)
    o = jnp.einsum("bic,bcd,bi->bid", qh, kv, z)
    o = o.reshape(B, num_heads, N, hd).transpose(0, 2, 1, 3).reshape(B, N, C)
    flatten_inds = voxel_inds.reshape(-1)
    arange = jnp.arange(flatten_inds.shape[0], dtype=flatten_inds.dtype)
    perm = jnp.zeros((num_coords,), dtype=flatten_inds.dtype).at[flatten_inds].set(arange)
    o = o.reshape(-1, C)[perm]
    return jnp.einsum("mc,cd->md", o, params["w_proj"]) + params["b_proj"]


if __name__ == "__main__":
    B, N, C, H = 8, 16, 32, 4   # num_set=8, points-per-set=16, dim=32, 4 heads
    key = jax.random.PRNGKey(0)
    ks = jax.random.split(key, 8)

    x = jax.random.normal(ks[0], (B, N, C), jnp.float32)
    pos = 0.1 * jax.random.normal(ks[1], (B, N, C), jnp.float32)
    mask = jax.random.bernoulli(ks[2], 0.9, (B, N)).astype(jnp.float32)
    M = B * N
    voxel_inds = jax.random.permutation(ks[3], jnp.arange(M, dtype=jnp.int32)).reshape(B, N)
    coords = jnp.zeros((M, 4), jnp.int32)  # only coords.shape[0] is used by the forward

    params = {
        "w_qkv": 0.05 * jax.random.normal(ks[4], (C, 3 * C), jnp.float32),
        "b_qkv": 0.01 * jax.random.normal(ks[5], (3 * C,), jnp.float32),
        "w_proj": 0.05 * jax.random.normal(ks[6], (C, C), jnp.float32),
        "b_proj": 0.01 * jax.random.normal(ks[7], (C,), jnp.float32),
        "scale": jnp.zeros((1, C), jnp.float32),   # matches torch.zeros((1, dim)) init
    }

    # TODO(synk): the commented-out spconv depth-wise conv branch (self.dwc /
    # SparseConvTensor) is dead code in the reference forward and is not implemented.

    ref = _reference(x, pos, mask, voxel_inds, coords.shape[0], params, H)

    # f32 path: tight validation against the pure-JAX reference.
    out = focused_linear_attention(x, pos, mask, voxel_inds, coords.shape[0],
                                   params, H, compute_dtype=jnp.float32)
    out = jax.block_until_ready(out)
    err = float(jnp.max(jnp.abs(out - ref)))
    assert jnp.allclose(out, ref, atol=2e-4, rtol=2e-4), f"f32 max abs err {err}"

    # bf16 DMA/MXU-input path (half the HBM traffic): loose validation.
    out16 = focused_linear_attention(x, pos, mask, voxel_inds, coords.shape[0],
                                     params, H, compute_dtype=jnp.bfloat16)
    out16 = jax.block_until_ready(out16)
    err16 = float(jnp.max(jnp.abs(out16 - ref)))
    assert jnp.allclose(out16, ref, atol=3e-2, rtol=3e-2), f"bf16 max abs err {err16}"

    print("KERNEL_OK")
</pallas_src>

<mosaic_0001>
module attributes {stable_mosaic.version = 11 : i64} {
  func.func @_fla_kernel(%arg0: i32, %arg1: memref<1x16x128xf32, #tpu.memory_space<vmem>>, %arg2: memref<1x16x128xf32, #tpu.memory_space<vmem>>, %arg3: memref<1x16x128xf32, #tpu.memory_space<vmem>>, %arg4: memref<128x384xf32, #tpu.memory_space<vmem>>, %arg5: memref<128x128xf32, #tpu.memory_space<vmem>>, %arg6: memref<8x128xf32, #tpu.memory_space<vmem>>, %arg7: memref<128x128xf32, #tpu.memory_space<vmem>>, %arg8: memref<128x128xf32, #tpu.memory_space<vmem>>, %arg9: memref<1x16x128xf32, #tpu.memory_space<vmem>>) attributes {dimension_semantics = [#tpu.dimension_semantics<parallel>], iteration_bounds = array<i64: 2>, scalar_prefetch = 0 : i64, scratch_operands = 0 : i64, tpu.core_type = #tpu.core_type<tc>, window_params = [{transform_indices = @transform_0, window_bounds = array<i64: 1, 16, 128>}, {transform_indices = @transform_1, window_bounds = array<i64: 1, 16, 128>}, {transform_indices = @transform_2, window_bounds = array<i64: 1, 16, 128>}, {pipeline_mode = #tpu.pipeline_mode<synchronous>, transform_indices = @transform_3, window_bounds = array<i64: 128, 384>}, {pipeline_mode = #tpu.pipeline_mode<synchronous>, transform_indices = @transform_4, window_bounds = array<i64: 128, 128>}, {pipeline_mode = #tpu.pipeline_mode<synchronous>, transform_indices = @transform_5, window_bounds = array<i64: 8, 128>}, {pipeline_mode = #tpu.pipeline_mode<synchronous>, transform_indices = @transform_6, window_bounds = array<i64: 128, 128>}, {pipeline_mode = #tpu.pipeline_mode<synchronous>, transform_indices = @transform_7, window_bounds = array<i64: 128, 128>}, {transform_indices = @transform_8, window_bounds = array<i64: 1, 16, 128>}]} {
    %c0 = arith.constant 0 : index
    %c0_0 = arith.constant 0 : index
    %c0_1 = arith.constant 0 : index
    %0 = vector.load %arg1[%c0, %c0_0, %c0_1] : memref<1x16x128xf32, #tpu.memory_space<vmem>>, vector<1x16x128xf32>
    %1 = vector.shape_cast %0 : vector<1x16x128xf32> to vector<16x128xf32>
    %c0_2 = arith.constant 0 : index
    %c0_3 = arith.constant 0 : index
    %c0_4 = arith.constant 0 : index
    %2 = vector.load %arg2[%c0_2, %c0_3, %c0_4] : memref<1x16x128xf32, #tpu.memory_space<vmem>>, vector<1x16x128xf32>
    %3 = vector.shape_cast %2 : vector<1x16x128xf32> to vector<16x128xf32>
    %c0_5 = arith.constant 0 : index
    %c0_6 = arith.constant 0 : index
    %c0_7 = arith.constant 0 : index
    %4 = vector.load %arg3[%c0_5, %c0_6, %c0_7] : memref<1x16x128xf32, #tpu.memory_space<vmem>>, vector<1x16x128xf32>
    %5 = vector.shape_cast %4 : vector<1x16x128xf32> to vector<16x128xf32>
    %c0_8 = arith.constant 0 : index
    %c0_9 = arith.constant 0 : index
    %6 = vector.load %arg6[%c0_8, %c0_9] : memref<8x128xf32, #tpu.memory_space<vmem>>, vector<8x128xf32>
    %7 = vector.extract_strided_slice %6 {offsets = [0, 0], sizes = [1, 128], strides = [1, 1]} : vector<8x128xf32> to vector<1x128xf32>
    %8 = vector.extract_strided_slice %6 {offsets = [1, 0], sizes = [1, 128], strides = [1, 1]} : vector<8x128xf32> to vector<1x128xf32>
    %9 = vector.extract_strided_slice %6 {offsets = [2, 0], sizes = [1, 128], strides = [1, 1]} : vector<8x128xf32> to vector<1x128xf32>
    %10 = vector.extract_strided_slice %6 {offsets = [3, 0], sizes = [1, 128], strides = [1, 1]} : vector<8x128xf32> to vector<1x128xf32>
    %11 = vector.extract_strided_slice %6 {offsets = [4, 0], sizes = [1, 128], strides = [1, 1]} : vector<8x128xf32> to vector<1x128xf32>
    %c0_10 = arith.constant 0 : index
    %c0_11 = arith.constant 0 : index
    %12 = vector.load %arg4[%c0_10, %c0_11] : memref<128x384xf32, #tpu.memory_space<vmem>>, vector<128x384xf32>
    %cst = arith.constant dense<0.000000e+00> : vector<16x384xf32>
    %13 = tpu.matmul %1, %12, %cst {dimension_numbers = #tpu.dot_dimension_numbers<[1], [0], [0], [1], [0, 0, 1, 1], [], []>} : vector<16x128xf32>, vector<128x384xf32>, vector<16x384xf32> -> vector<16x384xf32>
    %14 = vector.extract_strided_slice %13 {offsets = [0, 0], sizes = [16, 128], strides = [1, 1]} : vector<16x384xf32> to vector<16x128xf32>
    %15 = vector.broadcast %7 : vector<1x128xf32> to vector<16x128xf32>
    %16 = arith.addf %14, %15 : vector<16x128xf32>
    %17 = arith.addf %16, %3 : vector<16x128xf32>
    %18 = vector.extract_strided_slice %13 {offsets = [0, 128], sizes = [16, 128], strides = [1, 1]} : vector<16x384xf32> to vector<16x128xf32>
    %19 = vector.broadcast %8 : vector<1x128xf32> to vector<16x128xf32>
    %20 = arith.addf %18, %19 : vector<16x128xf32>
    %21 = arith.addf %20, %3 : vector<16x128xf32>
    %22 = vector.extract_strided_slice %13 {offsets = [0, 256], sizes = [16, 128], strides = [1, 1]} : vector<16x384xf32> to vector<16x128xf32>
    %23 = vector.broadcast %9 : vector<1x128xf32> to vector<16x128xf32>
    %24 = arith.addf %22, %23 : vector<16x128xf32>
    %cst_12 = arith.constant 0.000000e+00 : f32
    %25 = vector.broadcast %cst_12 : f32 to vector<16x128xf32>
    %26 = arith.maximumf %17, %25 : vector<16x128xf32>
    %cst_13 = arith.constant 9.99999997E-7 : f32
    %27 = vector.broadcast %cst_13 : f32 to vector<16x128xf32>
    %28 = arith.addf %26, %27 : vector<16x128xf32>
    %29 = vector.broadcast %10 : vector<1x128xf32> to vector<16x128xf32>
    %30 = arith.mulf %28, %29 : vector<16x128xf32>
    %cst_14 = arith.constant 0.000000e+00 : f32
    %31 = vector.broadcast %cst_14 : f32 to vector<16x128xf32>
    %32 = arith.maximumf %21, %31 : vector<16x128xf32>
    %cst_15 = arith.constant 9.99999997E-7 : f32
    %33 = vector.broadcast %cst_15 : f32 to vector<16x128xf32>
    %34 = arith.addf %32, %33 : vector<16x128xf32>
    %35 = vector.broadcast %10 : vector<1x128xf32> to vector<16x128xf32>
    %36 = arith.mulf %34, %35 : vector<16x128xf32>
    %c0_16 = arith.constant 0 : index
    %c0_17 = arith.constant 0 : index
    %37 = vector.load %arg8[%c0_16, %c0_17] : memref<128x128xf32, #tpu.memory_space<vmem>>, vector<128x128xf32>
    %c0_18 = arith.constant 0 : index
    %c0_19 = arith.constant 0 : index
    %38 = vector.load %arg7[%c0_18, %c0_19] : memref<128x128xf32, #tpu.memory_space<vmem>>, vector<128x128xf32>
    %39 = arith.mulf %30, %30 : vector<16x128xf32>
    %cst_20 = arith.constant dense<0.000000e+00> : vector<16x128xf32>
    %40 = tpu.matmul %39, %37, %cst_20 {dimension_numbers = #tpu.dot_dimension_numbers<[1], [0], [0], [1], [0, 0, 1, 1], [], []>} : vector<16x128xf32>, vector<128x128xf32>, vector<16x128xf32> -> vector<16x128xf32>
    %41 = arith.mulf %36, %36 : vector<16x128xf32>
    %cst_21 = arith.constant dense<0.000000e+00> : vector<16x128xf32>
    %42 = tpu.matmul %41, %37, %cst_21 {dimension_numbers = #tpu.dot_dimension_numbers<[1], [0], [0], [1], [0, 0, 1, 1], [], []>} : vector<16x128xf32>, vector<128x128xf32>, vector<16x128xf32> -> vector<16x128xf32>
    %43 = arith.mulf %30, %30 : vector<16x128xf32>
    %44 = arith.mulf %30, %43 : vector<16x128xf32>
    %45 = arith.mulf %36, %36 : vector<16x128xf32>
    %46 = arith.mulf %36, %45 : vector<16x128xf32>
    %47 = arith.mulf %44, %44 : vector<16x128xf32>
    %cst_22 = arith.constant dense<0.000000e+00> : vector<16x128xf32>
    %48 = tpu.matmul %47, %37, %cst_22 {dimension_numbers = #tpu.dot_dimension_numbers<[1], [0], [0], [1], [0, 0, 1, 1], [], []>} : vector<16x128xf32>, vector<128x128xf32>, vector<16x128xf32> -> vector<16x128xf32>
    %49 = arith.mulf %46, %46 : vector<16x128xf32>
    %cst_23 = arith.constant dense<0.000000e+00> : vector<16x128xf32>
    %50 = tpu.matmul %49, %37, %cst_23 {dimension_numbers = #tpu.dot_dimension_numbers<[1], [0], [0], [1], [0, 0, 1, 1], [], []>} : vector<16x128xf32>, vector<128x128xf32>, vector<16x128xf32> -> vector<16x128xf32>
    %51 = math.sqrt %40 : vector<16x128xf32>
    %52 = math.rsqrt %48 : vector<16x128xf32>
    %53 = arith.mulf %51, %52 : vector<16x128xf32>
    %54 = arith.mulf %44, %53 : vector<16x128xf32>
    %55 = math.sqrt %42 : vector<16x128xf32>
    %56 = math.rsqrt %50 : vector<16x128xf32>
    %57 = arith.mulf %55, %56 : vector<16x128xf32>
    %58 = arith.mulf %46, %57 : vector<16x128xf32>
    %59 = arith.mulf %58, %5 : vector<16x128xf32>
    %60 = vector.shape_cast %54 : vector<16x128xf32> to vector<1x16x128xf32>
    %61 = vector.shape_cast %59 : vector<16x128xf32> to vector<1x16x128xf32>
    %62 = vector.shape_cast %24 : vector<16x128xf32> to vector<1x16x128xf32>
    %cst_24 = arith.constant dense<0.000000e+00> : vector<1x128xf32>
    %63 = vector.multi_reduction <add>, %61, %cst_24 [1] : vector<1x16x128xf32> to vector<1x128xf32>
    %64 = vector.shape_cast %63 : vector<1x128xf32> to vector<1x1x128xf32>
    %65 = vector.broadcast %64 : vector<1x1x128xf32> to vector<1x16x128xf32>
    %66 = arith.mulf %60, %65 : vector<1x16x128xf32>
    %67 = vector.shape_cast %66 : vector<1x16x128xf32> to vector<16x128xf32>
    %cst_25 = arith.constant dense<0.000000e+00> : vector<16x128xf32>
    %68 = tpu.matmul %67, %38, %cst_25 {dimension_numbers = #tpu.dot_dimension_numbers<[1], [0], [0], [1], [0, 0, 1, 1], [], []>} : vector<16x128xf32>, vector<128x128xf32>, vector<16x128xf32> -> vector<16x128xf32>
    %cst_26 = arith.constant 9.99999997E-7 : f32
    %69 = vector.broadcast %cst_26 : f32 to vector<16x128xf32>
    %70 = arith.addf %68, %69 : vector<16x128xf32>
    %71 = tpu.reciprocal %70 {approx = true} : vector<16x128xf32> -> vector<16x128xf32>
    %72 = arith.mulf %70, %71 : vector<16x128xf32>
    %cst_27 = arith.constant 2.000000e+00 : f32
    %73 = vector.broadcast %cst_27 : f32 to vector<16x128xf32>
    %74 = arith.subf %73, %72 : vector<16x128xf32>
    %75 = arith.mulf %71, %74 : vector<16x128xf32>
    "tpu.trace_start"() <{level = 10 : i32, message = "bjc,bjd->bcd"}> : () -> ()
    %cst_28 = arith.constant dense<0.000000e+00> : vector<1x128x128xf32>
    %76 = tpu.matmul %61, %62, %cst_28 {dimension_numbers = #tpu.dot_dimension_numbers<[1], [1], [2], [2], [0, 0, 0, 2, 1, 2], [0], [0]>} : vector<1x16x128xf32>, vector<1x16x128xf32>, vector<1x128x128xf32> -> vector<1x128x128xf32>
    "tpu.trace_stop"() : () -> ()
    %77 = vector.shape_cast %38 : vector<128x128xf32> to vector<1x128x128xf32>
    %78 = arith.mulf %76, %77 : vector<1x128x128xf32>
    "tpu.trace_start"() <{level = 10 : i32, message = "bic,bcd->bid"}> : () -> ()
    %cst_29 = arith.constant dense<0.000000e+00> : vector<1x16x128xf32>
    %79 = tpu.matmul %60, %78, %cst_29 {dimension_numbers = #tpu.dot_dimension_numbers<[2], [1], [1], [2], [0, 0, 0, 1, 1, 2], [0], [0]>} : vector<1x16x128xf32>, vector<1x128x128xf32>, vector<1x16x128xf32> -> vector<1x16x128xf32>
    "tpu.trace_stop"() : () -> ()
    %80 = vector.shape_cast %79 : vector<1x16x128xf32> to vector<16x128xf32>
    %81 = arith.mulf %80, %75 : vector<16x128xf32>
    %c0_30 = arith.constant 0 : index
    %c0_31 = arith.constant 0 : index
    %82 = vector.load %arg5[%c0_30, %c0_31] : memref<128x128xf32, #tpu.memory_space<vmem>>, vector<128x128xf32>
    %cst_32 = arith.constant dense<0.000000e+00> : vector<16x128xf32>
    %83 = tpu.matmul %81, %82, %cst_32 {dimension_numbers = #tpu.dot_dimension_numbers<[1], [0], [0], [1], [0, 0, 1, 1], [], []>} : vector<16x128xf32>, vector<128x128xf32>, vector<16x128xf32> -> vector<16x128xf32>
    %84 = vector.broadcast %11 : vector<1x128xf32> to vector<16x128xf32>
    %85 = arith.addf %83, %84 : vector<16x128xf32>
    %86 = vector.shape_cast %85 : vector<16x128xf32> to vector<1x16x128xf32>
    %c0_33 = arith.constant 0 : index
    %c0_34 = arith.constant 0 : index
    %c0_35 = arith.constant 0 : index
    %87 = vector.load %arg9[%c0_33, %c0_34, %c0_35] : memref<1x16x128xf32, #tpu.memory_space<vmem>>, vector<1x16x128xf32>
    tpu.vector_store %arg9[%c0_33, %c0_34, %c0_35], %86 {strides = array<i32>} : memref<1x16x128xf32, #tpu.memory_space<vmem>>, vector<1x16x128xf32>,
    return
  }
  func.func @transform_0(%arg0: i32) -> (i32, i32, i32) {
    %c0_i32 = arith.constant 0 : i32
    %c0_i32_0 = arith.constant 0 : i32
    %c0_i32_1 = arith.constant 0 : i32
    return %arg0, %c0_i32, %c0_i32_0 : i32, i32, i32
  }
  func.func @transform_1(%arg0: i32) -> (i32, i32, i32) {
    %c0_i32 = arith.constant 0 : i32
    %c0_i32_0 = arith.constant 0 : i32
    %c0_i32_1 = arith.constant 0 : i32
    return %arg0, %c0_i32, %c0_i32_0 : i32, i32, i32
  }
  func.func @transform_2(%arg0: i32) -> (i32, i32, i32) {
    %c0_i32 = arith.constant 0 : i32
    %c0_i32_0 = arith.constant 0 : i32
    %c0_i32_1 = arith.constant 0 : i32
    return %arg0, %c0_i32, %c0_i32_0 : i32, i32, i32
  }
  func.func @transform_3(%arg0: i32) -> (i32, i32) {
    %c0_i32 = arith.constant 0 : i32
    %c0_i32_0 = arith.constant 0 : i32
    %c0_i32_1 = arith.constant 0 : i32
    return %c0_i32, %c0_i32_0 : i32, i32
  }
  func.func @transform_4(%arg0: i32) -> (i32, i32) {
    %c0_i32 = arith.constant 0 : i32
    %c0_i32_0 = arith.constant 0 : i32
    %c0_i32_1 = arith.constant 0 : i32
    return %c0_i32, %c0_i32_0 : i32, i32
  }
  func.func @transform_5(%arg0: i32) -> (i32, i32) {
    %c0_i32 = arith.constant 0 : i32
    %c0_i32_0 = arith.constant 0 : i32
    %c0_i32_1 = arith.constant 0 : i32
    return %c0_i32, %c0_i32_0 : i32, i32
  }
  func.func @transform_6(%arg0: i32) -> (i32, i32) {
    %c0_i32 = arith.constant 0 : i32
    %c0_i32_0 = arith.constant 0 : i32
    %c0_i32_1 = arith.constant 0 : i32
    return %c0_i32, %c0_i32_0 : i32, i32
  }
  func.func @transform_7(%arg0: i32) -> (i32, i32) {
    %c0_i32 = arith.constant 0 : i32
    %c0_i32_0 = arith.constant 0 : i32
    %c0_i32_1 = arith.constant 0 : i32
    return %c0_i32, %c0_i32_0 : i32, i32
  }
  func.func @transform_8(%arg0: i32) -> (i32, i32, i32) {
    %c0_i32 = arith.constant 0 : i32
    %c0_i32_0 = arith.constant 0 : i32
    %c0_i32_1 = arith.constant 0 : i32
    return %arg0, %c0_i32, %c0_i32_0 : i32, i32, i32
  }
}

</mosaic_0001>

<bundles_post_ra>
// kernel: tpu_custom_call.1
= control target key start
LH: loop header
LB: loop body
LE: loop exit
PB: predicated region body
PF: predicated region fallthrough
CT: control target
= control target key end

     0   :  { %s3377_s0 = inlined_call_operand.hbm [shape: f32[2,16,128], index: 0, kind: input, shape index: {}]   ;;  %s3378_s1 = inlined_call_operand.hbm [shape: f32[2,16,128], index: 1, kind: input, shape index: {}]   ;;  %s3379_s2 = inlined_call_operand.hbm [shape: f32[2,16,128], index: 2, kind: input, shape index: {}]   ;;  %s3380_s3 = inlined_call_operand.hbm [shape: f32[128,384], index: 3, kind: input, shape index: {}]   ;;  %s3381_s4 = inlined_call_operand.hbm [shape: f32[128,128], index: 4, kind: input, shape index: {}]   ;;  %s3382_s5 = inlined_call_operand.vmem [shape: f32[8,128], index: 5, kind: input, shape index: {}]   ;;  %s3383_s6 = inlined_call_operand.hbm [shape: f32[128,128], index: 6, kind: input, shape index: {}]   ;;  %s3384_s7 = inlined_call_operand.hbm [shape: f32[128,128], index: 7, kind: input, shape index: {}]   ;;  %s3385_s8 = inlined_call_operand.hbm [shape: f32[2,16,128], index: 8, kind: output, shape index: {}]  }
   0x1   :  { %3402 = sst [smem:[#allocation24_spill]] %s3378_s1 }
   0x2   :  { %3403 = sst [smem:[#allocation25_spill]] %s3380_s3 }
   0x3   :  { %3404 = sst [smem:[#allocation26_spill]] %s3383_s6 }
   0x4   :  { %13 = vsyncpa [#allocation3], 0 }
   0x5   :  { %15 = vsyncpa [#allocation3 + $0x1], 0 }
   0x6   :  { %16 = vsyncpa [#allocation6], 0 }
   0x7   :  { %18 = vsyncpa [#allocation6 + $0x1], 0 }
   0x8   :  { %19 = vsyncpa [#allocation9], 0 }
   0x9   :  { %20 = vsyncpa [#allocation12], 0 }
   0xa   :  { %21 = vsyncpa [#allocation4], 0 }
   0xb   :  { %23 = vsyncpa [#allocation4 + $0x1], 0  ;;  %s2736_s27 = smov 0   ;;  %s2738_s28 = smov 0  }
   0xc   :  { %s2740_s29 = smov 0   ;;  %s2742_s30 = smov 0  }
   0xd LB: > { %3405 = sst [smem:[#allocation20_spill]] %s2674_s30  ;;  %s2757_s9 = sadd.s32 4294967295, %s2674_s30   ;;  %s2674_s30 = sphi %s2742_s30, %s3437_s30   ;;  %s2670_s29 = sphi %s2740_s29, %s3441_s29   ;;  %s2666_s28 = sphi %s2738_s28, %s3440_s28   ;;  %s2662_s27 = sphi %s2736_s27, %s3439_s27  }
   0xe   : > { %s1766_s10 = sadd.s32 4294967294, %s2674_s30   ;;  %p49_p0 = scmp.ne.s32.totalorder %s2666_s28, %s2662_s27 }
   0xf   : > { %p3386_p1 = scmp.eq.s32.totalorder %s2757_s9, 0  ;;  %p236_p3 = scmp.eq.s32.totalorder %s1766_s10, 1 }
  0x10   : > { %p1767_p5 = scmp.ge.s32.totalorder %s2674_s30, 1  ;;  %p243_p7 = scmp.lt.s32.totalorder %s2674_s30, 3 }
  0x11   : > { %p2766_p4 = por %p3386_p1, %p49_p0  ;;  %p2771_p6 = por %p236_p3, %p49_p0 }
  0x12   : > { %p2776_p8 = pnand %p1767_p5, %p243_p7  ;;  %s2676_s14 = smov [#allocation8]  }
  0x13   : > { %s3406_s11 = scalar_select %p2766_p4, 1, 0 }
  0x14   : > { %s3407_s12 = scalar_select %p2771_p6, 1, 0 }
  0x15   : > { %s3409_s13 = scalar_select %p2776_p8, 1, 0 }
  0x16   : > { %3408 = sst [smem:[#allocation21_spill]] %s3407_s12  ;;  %s255_s15 = sshll.u32 %s2676_s14, 4  ;;  %s256_s15 = int_to_ptr.vmem [resolvable:$true] %s255_s15 }
  0x17   : > { %p2310_p9 = pneg %p2776_p8  ;;  %s2677_s17 = smov [#allocation11]  }
  0x18   : > { %s284_s18 = sshll.u32 %s2677_s17, 4  ;;  %s2421_s19 = scalar_lea.vmem %s256_s15, 6144  ;;  %s285_s18 = int_to_ptr.vmem [resolvable:$true] %s284_s18 }
  0x19   : > { %p2785_p11 = pnand %p2310_p9, %p3386_p1  ;;  %p2422_p13 = scmp.ne.s32.totalorder %s256_s15, %s2421_s19 }
  0x1a   : > { %p2429_p5 = scmp.lt.s32.totalorder %s256_s15, %s256_s15  ;;  %p2430_p7 = scmp.lt.s32.totalorder %s2421_s19, %s2421_s19 }
  0x1b   : > { %s3410_s16 = scalar_select %p2785_p11, 1, 0 }
  0x1c   : > { %p3395_p12 = pneg %p2785_p11  ;;  %p2431_p10 = por %p2430_p7, %p2429_p5 }
  0x1e   : > { %p2424_p0 = pnand %p2422_p13, %p3395_p12 }
  0x20   : > { %p2425_p3 = pneg %p2424_p0 }
  0x22   : > { %p2432_p2 = pnand %p2431_p10, %p2425_p3 }
  0x24   : > { %2435 = shalt.err (!%p2432_p2)
}
  0x25   : > { %s2678_s20 = smov 384   ;;  %s2679_s21 = smov 24  }
  0x26   : > { %s3411_s3 = sld [smem:[#allocation25_spill]]  ;;  %s2447_s24 = scalar_lea.vmem %s285_s18, 2048 }
  0x27   : > { %p2448_p9 = scmp.ne.s32.totalorder %s285_s18, %s2447_s24  ;;  %p2455_p1 = scmp.lt.s32.totalorder %s285_s18, %s285_s18 }
  0x28   : > { %p2456_p5 = scmp.lt.s32.totalorder %s2447_s24, %s2447_s24 }
  0x29   : > { %p2450_p13 = pnand %p2448_p9, %p3395_p12 }
  0x2a   : > { %p2457_p10 = por %p2456_p5, %p2455_p1 }
  0x2b   : > { %p2451_p0 = pneg %p2450_p13 }
  0x2c   : > { %2313 = dma.hbm_to_vmem [thread:$0]  (!%p2785_p11), %s3411_s3, 6144, %s256_s15, [#allocation9], %s2678_s20, %s2678_s20, %s2679_s21  }
  0x2d   : > { %p2458_p2 = pnand %p2457_p10, %p2451_p0 }
  0x2f   : > { %2461 = shalt.err (!%p2458_p2)
}
  0x30   : > { %s3388_s25 = smov 128   ;;  %s3390_s26 = smov 8  }
  0x31   : > { %s3412_s6 = sld [smem:[#allocation26_spill]]  ;;  %s2811_s15 = sadd.s32 1, %s2674_s30  }
  0x32   : > { %3413 = sst [smem:[#allocation22_spill]] %s2811_s15  ;;  %s36_s17 = sadd.s32 1, %s2670_s29 }
  0x33   : > { %s33_s19 = ssub.s32 %s2674_s30, %s2811_s15  ;;  %p43_p1 = scmp.ne.s32.totalorder %s2670_s29, %s2666_s28 }
  0x34   : > { %p34_p3 = scmp.eq.s32.totalorder %s33_s19, 0  ;;  %p44_p7 = scmp.eq.s32.totalorder %s2674_s30, 0 }
  0x35   : > { %p3414_p9 = scmp.eq.s32.totalorder %s2757_s9, 1  ;;  %p2341_p0 = scmp.lt.s32.totalorder %s2674_s30, 2 }
  0x36   : > { %s2827_s21 = scalar_select %p34_p3, %s2670_s29, %s36_s17  }
  0x37   : > { %2319 = dma.hbm_to_vmem [thread:$0]  (!%p2785_p11), %s3412_s6, 2048, %s285_s18, [#allocation12], %s3388_s25, %s3388_s25, %s3390_s26  }
  0x38   : > { %p2821_p13 = por %p3414_p9, %p43_p1  ;;  %3416 = sst [smem:[#allocation23_spill]] %s2827_s21 }
  0x39   : > { %p45_p5 = por %p44_p7, %p43_p1  ;;  %s3387_s22 = sand.u32 1, %s2670_s29  }
  0x3a   : > { %s3415_s20 = scalar_select %p2821_p13, 1, 0 }
  0x3b   : > { %s2832_s18 = sshll.u32 %s3387_s22, 4  ;;  %s2835_s23 = sshll.u32 %s2674_s30, 8 }
  0x3c   : > { %p2837_p10 = pnand %p2341_p0, %p45_p5  ;;  %s332_s10 = sand.u32 1, %s2674_s30  }
  0x3d   : > { %s3418_s1 = sld [smem:[#allocation24_spill]]  ;;  %s336_s22 = scalar_lea.vmem [#allocation5], %s2832_s18 }
  0x3e   : > { %s343_s25 = sshll.u32 %s336_s22, 4  ;;  %s2682_s26 = smov [#allocation10]   ;;  %s2849_s25 = int_to_ptr.vmem [resolvable:$true] %s343_s25 }
  0x3f   : > { %s2851_s3 = sshll.u32 %s2682_s26, 4  ;;  %s2853_s6 = scalar_lea.sflag [#allocation6], %s332_s10  ;;  %s269_s3 = int_to_ptr.vmem [resolvable:$true] %s2851_s3 }
  0x40   : > { %p2859_p1 = pneg %p2837_p10 }
  0x43   : > { %s2846_s17 = scalar_lea.hbm %s3418_s1, %s2835_s23  ;;  %s2467_s19 = scalar_lea.hbm %s3418_s1, 512 }
  0x44   : > { %s2462_s21 = scalar_lea.hbm %s2846_s17, 256  ;;  %p2468_p9 = scmp.lt.s32.totalorder %s2846_s17, %s3418_s1 }
  0x45   : > { %p2463_p2 = scmp.ne.s32.totalorder %s2846_s17, %s2462_s21  ;;  %p2469_p0 = scmp.lt.s32.totalorder %s2467_s19, %s2462_s21 }
  0x47   : > { %p2465_p3 = pnand %p2859_p1, %p2463_p2  ;;  %p2470_p5 = por %p2469_p0, %p2468_p9 }
  0x49   : > { %p2466_p7 = pneg %p2465_p3 }
  0x4b   : > { %p2471_p12 = pnand %p2470_p5, %p2466_p7 }
  0x4d   : > { %2474 = shalt.err (!%p2471_p12)
}
  0x4e   : > { %s2475_s10 = scalar_lea.vmem %s2849_s25, 256  ;;  %s2683_s12 = smov [#allocation5]  }
  0x4f   : > { %p2476_p6 = scmp.ne.s32.totalorder %s2849_s25, %s2475_s10  ;;  %s2480_s14 = sshll.u32 %s2683_s12, 4  ;;  %s2481_s14 = int_to_ptr.vmem [resolvable:$false] %s2480_s14 }
  0x50   : > { %s2482_s22 = scalar_lea.vmem %s2481_s14, 512  ;;  %p2483_p13 = scmp.lt.s32.totalorder %s2849_s25, %s2481_s14 }
  0x51   : > { %p2478_p2 = pnand %p2476_p6, %p2859_p1  ;;  %p2484_p4 = scmp.lt.s32.totalorder %s2482_s22, %s2475_s10 }
  0x53   : > { %p2479_p3 = pneg %p2478_p2  ;;  %p2485_p8 = por %p2484_p4, %p2483_p13 }
  0x55   : > { %p2486_p11 = pnand %p2485_p8, %p2479_p3 }
  0x57   : > { %2489 = shalt.err (!%p2486_p11)
}
  0x58   : > { %s3420_s30 = smov 8   ;;  %s3421_s21 = smov 128  }
  0x59   : > { %2329 = dma.hbm_to_vmem [thread:$0]  (!%p2837_p10), %s2846_s17, 256, %s2849_s25, %s2853_s6, %s3421_s21, %s3421_s21, %s3420_s30  }
  0x5a   : > { %s2501_s12 = scalar_lea.vmem %s269_s3, 2048  ;;  %p3422_p12 = scmp.ne.s32.totalorder %s3410_s16, 0 }
  0x5b   : > { %p2502_p6 = scmp.ne.s32.totalorder %s269_s3, %s2501_s12  ;;  %p2509_p8 = scmp.lt.s32.totalorder %s269_s3, %s269_s3 }
  0x5c   : > { %p3423_p7 = pneg %p3422_p12  ;;  %p2510_p11 = scmp.lt.s32.totalorder %s2501_s12, %s2501_s12 }
  0x5e   : > { %p2504_p9 = pnand %p2502_p6, %p3423_p7  ;;  %p2511_p13 = por %p2510_p11, %p2509_p8 }
  0x60   : > { %p2505_p4 = pneg %p2504_p9 }
  0x62   : > { %p2512_p0 = pnand %p2511_p13, %p2505_p4 }
  0x64   : > { %2515 = shalt.err (!%p2512_p0)
}
  0x65   : > { %2316 = dma.hbm_to_vmem [thread:$0]  (!%p3422_p12), %s3381_s4, 2048, %s269_s3, [#allocation9], %s3421_s21, %s3421_s21, %s3420_s30  }
  0x66   : > { %s2684_s25 = smov [#allocation13]   ;;  %p3424_p2 = pmov %p3423_p7 }
  0x67   : > { %s297_s17 = sshll.u32 %s2684_s25, 4  ;;  %s298_s17 = int_to_ptr.vmem [resolvable:$true] %s297_s17 }
  0x68   : > { %s2527_s10 = scalar_lea.vmem %s298_s17, 2048  ;;  %p2535_p7 = scmp.lt.s32.totalorder %s298_s17, %s298_s17 }
  0x69   : > { %p2528_p5 = scmp.ne.s32.totalorder %s298_s17, %s2527_s10  ;;  %p2536_p9 = scmp.lt.s32.totalorder %s2527_s10, %s2527_s10 }
  0x6b   : > { %p2530_p3 = pnand %p2528_p5, %p3424_p2  ;;  %p2537_p4 = por %p2536_p9, %p2535_p7 }
  0x6d   : > { %p2531_p6 = pneg %p2530_p3 }
  0x6f   : > { %p2538_p8 = pnand %p2537_p4, %p2531_p6 }
  0x71   : > { %2541 = shalt.err (!%p2538_p8)
}
  0x72   : > { %2322 = dma.hbm_to_vmem [thread:$0]  (!%p3422_p12), %s3384_s7, 2048, %s298_s17, [#allocation12], %s3421_s21, %s3421_s21, %s3420_s30  }
  0x73   : > { %s2912_s19 = scalar_lea.hbm %s3377_s0, %s2835_s23  ;;  %s315_s16 = scalar_lea.vmem [#allocation2], %s2832_s18 }
  0x74   : > { %s322_s26 = sshll.u32 %s315_s16, 4  ;;  %s3425_s25 = sand.u32 1, %s2670_s29   ;;  %s2915_s26 = int_to_ptr.vmem [resolvable:$true] %s322_s26 }
  0x75   : > { %s312_s10 = scalar_lea.sflag [#allocation3], %s3425_s25  ;;  %s2542_s3 = scalar_lea.hbm %s2912_s19, 256 }
  0x76   : > { %p2543_p11 = scmp.ne.s32.totalorder %s2912_s19, %s2542_s3  ;;  %s2547_s22 = scalar_lea.hbm %s3377_s0, 512 }
  0x77   : > { %p2548_p12 = scmp.lt.s32.totalorder %s2912_s19, %s3377_s0  ;;  %p2549_p5 = scmp.lt.s32.totalorder %s2547_s22, %s2542_s3 }
  0x78   : > { %p2545_p13 = pnand %p2543_p11, %p2859_p1 }
  0x79   : > { %p2550_p2 = por %p2549_p5, %p2548_p12 }
  0x7a   : > { %p2546_p0 = pneg %p2545_p13 }
  0x7c   : > { %p2551_p3 = pnand %p2550_p2, %p2546_p0 }
  0x7e   : > { %2554 = shalt.err (!%p2551_p3)
}
  0x7f   : > { %s2555_s16 = scalar_lea.vmem %s2915_s26, 256  ;;  %s2685_s25 = smov [#allocation2]  }
  0x80   : > { %p2556_p6 = scmp.ne.s32.totalorder %s2915_s26, %s2555_s16  ;;  %s2560_s17 = sshll.u32 %s2685_s25, 4  ;;  %s2561_s17 = int_to_ptr.vmem [resolvable:$false] %s2560_s17 }
  0x81   : > { %s2562_s14 = scalar_lea.vmem %s2561_s17, 512  ;;  %p2563_p4 = scmp.lt.s32.totalorder %s2915_s26, %s2561_s17 }
  0x82   : > { %p2558_p7 = pnand %p2556_p6, %p2859_p1  ;;  %p2564_p8 = scmp.lt.s32.totalorder %s2562_s14, %s2555_s16 }
  0x84   : > { %p2559_p9 = pneg %p2558_p7  ;;  %p2565_p11 = por %p2564_p8, %p2563_p4 }
  0x86   : > { %p2566_p13 = pnand %p2565_p11, %p2559_p9 }
  0x88   : > { %2569 = shalt.err (!%p2566_p13)
}
  0x89   : > { %2326 = dma.hbm_to_vmem [thread:$0]  (!%p2837_p10), %s2912_s19, 256, %s2915_s26, %s312_s10, %s3421_s21, %s3421_s21, %s3420_s30  }
  0x8a   : > { %s2946_s22 = scalar_lea.hbm %s3379_s2, %s2835_s23  ;;  %s357_s12 = scalar_lea.vmem [#allocation7], %s2832_s18 }
  0x8b   : > { %s364_s16 = sshll.u32 %s357_s12, 4  ;;  %s2570_s25 = scalar_lea.hbm %s2946_s22, 256  ;;  %s365_s16 = int_to_ptr.vmem [resolvable:$true] %s364_s16 }
  0x8c   : > { %p2571_p0 = scmp.ne.s32.totalorder %s2946_s22, %s2570_s25  ;;  %s2575_s19 = scalar_lea.hbm %s3379_s2, 512 }
  0x8d   : > { %p2576_p2 = scmp.lt.s32.totalorder %s2946_s22, %s3379_s2  ;;  %p2577_p3 = scmp.lt.s32.totalorder %s2575_s19, %s2570_s25 }
  0x8e   : > { %p2573_p12 = pnand %p2571_p0, %p2859_p1 }
  0x8f   : > { %p2578_p6 = por %p2577_p3, %p2576_p2 }
  0x90   : > { %p2574_p5 = pneg %p2573_p12 }
  0x92   : > { %p2579_p7 = pnand %p2578_p6, %p2574_p5 }
  0x94   : > { %2582 = shalt.err (!%p2579_p7)
}
  0x95   : > { %s2583_s18 = scalar_lea.vmem %s365_s16, 256  ;;  %s2686_s23 = smov [#allocation7]  }
  0x96   : > { %p2584_p9 = scmp.ne.s32.totalorder %s365_s16, %s2583_s18  ;;  %s2588_s1 = sshll.u32 %s2686_s23, 4  ;;  %s2589_s1 = int_to_ptr.vmem [resolvable:$false] %s2588_s1 }
  0x97   : > { %s2590_s3 = scalar_lea.vmem %s2589_s1, 512  ;;  %p2591_p11 = scmp.lt.s32.totalorder %s365_s16, %s2589_s1 }
  0x98   : > { %p2586_p4 = pnand %p2584_p9, %p2859_p1  ;;  %p2592_p13 = scmp.lt.s32.totalorder %s2590_s3, %s2583_s18 }
  0x9a   : > { %p2587_p8 = pneg %p2586_p4  ;;  %p2593_p0 = por %p2592_p13, %p2591_p11 }
  0x9c   : > { %p2594_p12 = pnand %p2593_p0, %p2587_p8 }
  0x9e   : > { %2597 = shalt.err (!%p2594_p12)
}
  0x9f   : > { %2332 = dma.hbm_to_vmem [thread:$0]  (!%p2837_p10), %s2946_s22, 256, %s365_s16, %s2853_s6, %s3421_s21, %s3421_s21, %s3420_s30  }
  0xa0   : > { %p3426_p1 = scmp.ne.s32.totalorder %s3409_s13, 0 }
  0xa1   : > { %s2972_s15 = sand.u32 (!%p3426_p1), 1, %s2666_s28   ;;  %p3427_p5 = scmp.ne.s32.totalorder (!%p3426_p1), %s3406_s11, 0 }
  0xa2   : > { %376 = sbr.rel (%p3426_p1) target bundleno = 1491 (0x5d3), region = 52  ;;  %s2975_s12 = sshll.u32 (!%p3426_p1), %s2972_s15, 4 }
  0xa3   : > { %s379_s25 = scalar_lea.sflag (!%p3426_p1), [#allocation3], %s2972_s15  ;;  %s382_s24 = scalar_lea.vmem (!%p3426_p1), [#allocation2], %s2975_s12 }
  0xa7   : > { %2641 = dma.done.wait (%p3427_p5), %s379_s25, 256  }
  0xa8   : > { %2643 = vsyncadd (%p3427_p5), %s379_s25, 4294967040  ;;  %s387_s6 = sand.u32 1, %s2757_s9   ;;  %s391_s30 = scalar_lea.vmem [#allocation5], %s2975_s12 }
  0xa9   : > { %s388_s13 = scalar_lea.sflag [#allocation6], %s387_s6 }
  0xaa   : > { %2645 = dma.done.wait (%p3427_p5), %s388_s13, 512  }
  0xab   : > { %2647 = vsyncadd (%p3427_p5), %s388_s13, 4294966784  ;;  %s400_s21 = scalar_lea.vmem [#allocation7], %s2975_s12  ;;  %p3428_p10 = scmp.eq.s32.totalorder %s2757_s9, 0 }
  0xad   : > { %2649 = dma.done.wait (%p3428_p10), [#allocation9], 8192   ;;  %p3429_p2 = pmov %p3428_p10 }
  0xaf   : > { %2651 = vsyncadd (%p3429_p2), [#allocation9], 4294959104  ;;  %p3430_p3 = pmov %p3429_p2 }
  0xb0   : > { %p3431_p6 = pmov %p3429_p2 }
  0xb1   : > { %2653 = dma.done.wait (%p3430_p3), [#allocation12], 4096  }
  0xb2   : > { %2655 = vsyncadd (%p3431_p6), [#allocation12], 4294963200  ;;  %v2687_v0 = vmov 0.0   ;;  %v512_v1 = vld [vmem:[#allocation8 + $0x170] sm:$0xff]  ;;  %v511_v2 = vld [vmem:[#allocation8 + $0x168] sm:$0xff]  ;;  %vm1214_vm8 = vcmask 130048  }
  0xb3   : > { %578 = vmatprep.mubr.f32.mxu0 %v2687_v0  ;;  %v509_v3 = vld [vmem:[#allocation8 + $0x158] sm:$0xff]  ;;  %514 = vmatprep.subr.mxu0 %v512_v1  ;;  %v508_v4 = vld [vmem:[#allocation8 + $0x150] sm:$0xff]  ;;  %v506_v5 = vld [vmem:[#allocation8 + $0x140] sm:$0xff]  ;;  %s458_s16 = scalar_lea.vmem [#allocation14], %s2975_s12  ;;  %s1815_s14 = sshll.u32 %s2757_s9, 8 }
  0xb4   : > { %515 = vmatpush1.msra.mxu0 %v511_v2  ;;  %v505_v6 = vld [vmem:[#allocation8 + $0x138] sm:$0xff]  ;;  %v503_v7 = vld [vmem:[#allocation8 + $0x128] sm:$0xff]  ;;  %v502_v8 = vld [vmem:[#allocation8 + $0x120] sm:$0xff]  ;;  %s1612_s17 = sshll.u32 %s458_s16, 4  ;;  %s3334_s10 = scalar_lea.hbm %s3385_s8, %s1815_s14  ;;  %s3329_s17 = int_to_ptr.vmem [resolvable:$true] %s1612_s17 }
  0xb5   : > { %516 = vmatprep.subr.mxu0 %v509_v3  ;;  %v500_v9 = vld [vmem:[#allocation8 + $0x110] sm:$0xff]  ;;  %v499_v10 = vld [vmem:[#allocation8 + $0x108] sm:$0xff]  ;;  %v497_v11 = vld [vmem:[#allocation8 + $0xf8] sm:$0xff]  ;;  %v666_v3 = vlaneseq  ;;  %s1599_s18 = scalar_lea.sflag [#allocation4], %s2972_s15  ;;  %s2598_s23 = scalar_lea.vmem %s3329_s17, 256 }
  0xb6   : > { %517 = vmatpush1.msra.mxu0 %v508_v4  ;;  %v496_v12 = vld [vmem:[#allocation8 + $0xf0] sm:$0xff]  ;;  %v494_v13 = vld [vmem:[#allocation8 + $0xe0] sm:$0xff]  ;;  %v493_v15 = vld [vmem:[#allocation8 + $0xd8] sm:$0xff]  ;;  %p2599_p7 = scmp.ne.s32.totalorder %s3329_s17, %s2598_s23  ;;  %p3432_p9 = scmp.ne.s32.totalorder %s3415_s20, 0 }
  0xb7   : > { %518 = vmatprep.subr.mxu0 %v506_v5  ;;  %v3001_v14 = vld [vmem:[%s382_s24] sm:$0xff]  ;;  %v513_v16 = vld [vmem:[#allocation8 + $0x178] sm:$0xff]  ;;  %v491_v18 = vld [vmem:[#allocation8 + $0xc8] sm:$0xff]  ;;  %v3106_v4 = vshrl.u32 %v666_v3, 7  ;;  %s2688_s9 = smov [#allocation14]  }
  0xb8   : > { %519 = vmatpush1.msra.mxu0 %v505_v6  ;;  %v510_v17 = vld [vmem:[#allocation8 + $0x160] sm:$0xff]  ;;  %2010 = vmatprep.mubr.f32.mxu1 %v3001_v14  ;;  %v507_v20 = vld [vmem:[#allocation8 + $0x148] sm:$0xff]  ;;  %v488_v21 = vld [vmem:[#allocation8 + $0xb0] sm:$0xff]  ;;  %p2600_p4 = pnand %p2599_p7, %p3432_p9  ;;  %s2602_s1 = sshll.u32 %s2688_s9, 4  ;;  %s2603_s1 = int_to_ptr.vmem [resolvable:$false] %s2602_s1 }
  0xb9   : > { %520 = vmatprep.subr.mxu0 %v503_v7  ;;  %1978 = vmatprep.subr.mxu1 %v513_v16  ;;  %v490_v19 = vld [vmem:[#allocation8 + $0xc0] sm:$0xff]  ;;  %v487_v22 = vld [vmem:[#allocation8 + $0xa8] sm:$0xff]  ;;  %v504_v23 = vld [vmem:[#allocation8 + $0x130] sm:$0xff]  ;;  %v668_v5 = vsub.s32 0, %v3106_v4  ;;  %v676_v7 = vsub.s32 1, %v3106_v4  ;;  %s2604_s3 = scalar_lea.vmem %s2603_s1, 512  ;;  %p2605_p11 = scmp.lt.s32.totalorder %s3329_s17, %s2603_s1 }
  0xba   : > { %521 = vmatpush1.msra.mxu0 %v502_v8  ;;  %1979 = vmatpush3.msra.mxu1 %v513_v16  ;;  %v485_v24 = vld [vmem:[#allocation8 + $0x98] sm:$0xff]  ;;  %v484_v25 = vld [vmem:[#allocation8 + $0x90] sm:$0xff]  ;;  %v482_v27 = vld [vmem:[#allocation8 + $0x80] sm:$0xff]  ;;  %p2601_p8 = pneg %p2600_p4  ;;  %p2606_p13 = scmp.lt.s32.totalorder %s2604_s3, %s2598_s23 }
  0xbb   : > { %522 = vmatprep.subr.mxu0 %v500_v9  ;;  %1980 = vmatprep.subr.mxu1 %v510_v17  ;;  %v501_v26 = vld [vmem:[#allocation8 + $0x118] sm:$0xff]  ;;  %v498_v29 = vld [vmem:[#allocation8 + $0x100] sm:$0xff]  ;;  %v479_v30 = vld [vmem:[#allocation8 + $0x68] sm:$0xff] }
  0xbc   : > { %523 = vmatpush1.msra.mxu0 %v499_v10  ;;  %1981 = vmatpush3.msra.mxu1 %v510_v17  ;;  %v481_v28 = vld [vmem:[#allocation8 + $0x78] sm:$0xff]  ;;  %v478_v31 = vld [vmem:[#allocation8 + $0x60] sm:$0xff]  ;;  %v495_v32 = vld [vmem:[#allocation8 + $0xe8] sm:$0xff]  ;;  %p2607_p0 = por %p2606_p13, %p2605_p11 }
  0xbd   : > { %524 = vmatprep.subr.mxu0 %v497_v11  ;;  %1982 = vmatprep.subr.mxu1 %v507_v20  ;;  %v476_v33 = vld [vmem:[#allocation8 + $0x50] sm:$0xff]  ;;  %v475_v34 = vld [vmem:[#allocation8 + $0x48] sm:$0xff]  ;;  %v473_v36 = vld [vmem:[#allocation8 + $0x38] sm:$0xff] }
  0xbe   : > { %525 = vmatpush1.msra.mxu0 %v496_v12  ;;  %1983 = vmatpush3.msra.mxu1 %v507_v20  ;;  %v492_v35 = vld [vmem:[#allocation8 + $0xd0] sm:$0xff]  ;;  %v489_v38 = vld [vmem:[#allocation8 + $0xb8] sm:$0xff]  ;;  %v470_v39 = vld [vmem:[#allocation8 + $0x20] sm:$0xff]  ;;  %p2608_p12 = pnand %p2607_p0, %p2601_p8 }
  0xbf   : > { %526 = vmatprep.subr.mxu0 %v494_v13  ;;  %1984 = vmatprep.subr.mxu1 %v504_v23  ;;  %v472_v37 = vld [vmem:[#allocation8 + $0x30] sm:$0xff]  ;;  %v469_v40 = vld [vmem:[#allocation8 + $0x18] sm:$0xff]  ;;  %v486_v41 = vld [vmem:[#allocation8 + $0xa0] sm:$0xff]  ;;  %v694_v13 = vsub.s32 3, %v3106_v4 }
  0xc0   : > { %527 = vmatpush1.msra.mxu0 %v493_v15  ;;  %1985 = vmatpush3.msra.mxu1 %v504_v23  ;;  %v467_v42 = vld [vmem:[#allocation8 + $0x8] sm:$0xff]  ;;  %v466_v43 = vld [vmem:[#allocation8] sm:$0xff]  ;;  %v480_v45 = vld [vmem:[#allocation8 + $0x70] sm:$0xff] }
  0xc1   : > { %528 = vmatprep.subr.mxu0 %v491_v18  ;;  %1986 = vmatprep.subr.mxu1 %v501_v26  ;;  %v483_v44 = vld [vmem:[#allocation8 + $0x88] sm:$0xff]  ;;  %v3004_v46 = vld [vmem:[#allocation13 + $0x78] sm:$0xff]  ;;  %v474_v49 = vld [vmem:[#allocation8 + $0x40] sm:$0xff] }
  0xc2   : > { %529 = vmatpush1.msra.mxu0 %v490_v19  ;;  %1987 = vmatpush3.msra.mxu1 %v501_v26  ;;  %v477_v47 = vld [vmem:[#allocation8 + $0x58] sm:$0xff]  ;;  %v3011_v50 = vld [vmem:[#allocation13 + $0x70] sm:$0xff]  ;;  %v471_v51 = vld [vmem:[#allocation8 + $0x28] sm:$0xff] }
  0xc3   : > { %530 = vmatprep.subr.mxu0 %v488_v21  ;;  %1988 = vmatprep.subr.mxu1 %v498_v29  ;;  %v460_v48 = vld [vmem:[%s382_s24 + $0x8] sm:$0xff]  ;;  %v468_v53 = vld [vmem:[#allocation8 + $0x10] sm:$0xff]  ;;  %v3018_v54 = vld [vmem:[#allocation13 + $0x60] sm:$0xff] }
  0xc4   : > { %531 = vmatpush1.msra.mxu0 %v487_v22  ;;  %1989 = vmatpush3.msra.mxu1 %v498_v29  ;;  %v3014_v52 = vld [vmem:[#allocation13 + $0x68] sm:$0xff]  ;;  %v3023_v55 = vld [vmem:[#allocation13 + $0x58] sm:$0xff]  ;;  %v3027_v56 = vld [vmem:[#allocation13 + $0x50] sm:$0xff] }
  0xc5   : > { %532 = vmatprep.subr.mxu0 %v485_v24  ;;  %1990 = vmatprep.subr.mxu1 %v495_v32  ;;  %v3033_v57 = vld [vmem:[#allocation13 + $0x48] sm:$0xff]  ;;  %v3039_v58 = vld [vmem:[#allocation13 + $0x40] sm:$0xff]  ;;  %v3056_v59 = vld [vmem:[#allocation13 + $0x38] sm:$0xff] }
  0xc6   : > { %533 = vmatpush1.msra.mxu0 %v484_v25  ;;  %1991 = vmatpush3.msra.mxu1 %v495_v32  ;;  %v3061_v60 = vld [vmem:[#allocation13 + $0x30] sm:$0xff]  ;;  %v3067_v61 = vld [vmem:[#allocation13 + $0x28] sm:$0xff]  ;;  %v3073_v62 = vld [vmem:[#allocation13 + $0x20] sm:$0xff] }
  0xc7   : > { %534 = vmatprep.subr.mxu0 %v482_v27  ;;  %1992 = vmatprep.subr.mxu1 %v492_v35  ;;  %v3079_v63 = vld [vmem:[#allocation13 + $0x18] sm:$0xff]  ;;  %v3091_v1 = vld [vmem:[#allocation13 + $0x8] sm:$0xff]  ;;  %v3097_v2 = vld [vmem:[#allocation13] sm:$0xff] }
  0xc8   : > { %535 = vmatpush1.msra.mxu0 %v481_v28  ;;  %1993 = vmatpush3.msra.mxu1 %v492_v35  ;;  %v3112_v6 = vld [vmem:[%s3382_s5] sm:$0xff]  ;;  %v462_v17 = vld [vmem:[%s391_s30 + $0x8] sm:$0xff] }
  0xc9   : > { %536 = vmatprep.subr.mxu0 %v479_v30  ;;  %1994 = vmatprep.subr.mxu1 %v489_v38  ;;  %v669_v8 = vrot.slane %v3112_v6, %v668_v5  ;;  %v677_v9 = vrot.slane %v3112_v6, %v676_v7  ;;  %v461_v10 = vld [vmem:[%s391_s30] sm:$0xff]  ;;  %v695_v20 = vrot.slane %v3112_v6, %v694_v13  ;;  %v3265_v5 = vld [vmem:[#allocation11 + $0x18] sm:$0xff] }
  0xca   : > { %537 = vmatpush1.msra.mxu0 %v478_v31  ;;  %1995 = vmatpush3.msra.mxu1 %v489_v38  ;;  %v3261_v3 = vld [vmem:[#allocation11 + $0x20] sm:$0xff]  ;;  %v3267_v7 = vld [vmem:[#allocation11 + $0x10] sm:$0xff] }
  0xcb   : > { %538 = vmatprep.subr.mxu0 %v476_v33  ;;  %1996 = vmatprep.subr.mxu1 %v486_v41 }
  0xcc   : > { %539 = vmatpush1.msra.mxu0 %v475_v34  ;;  %1997 = vmatpush3.msra.mxu1 %v486_v41 }
  0xcd   : > { %540 = vmatprep.subr.mxu0 %v473_v36  ;;  %1998 = vmatprep.subr.mxu1 %v483_v44 }
  0xce   : > { %541 = vmatpush1.msra.mxu0 %v472_v37  ;;  %1999 = vmatpush3.msra.mxu1 %v483_v44 }
  0xcf   : > { %542 = vmatprep.subr.mxu0 %v470_v39  ;;  %2000 = vmatprep.subr.mxu1 %v480_v45 }
  0xd0   : > { %543 = vmatpush1.msra.mxu0 %v469_v40  ;;  %2001 = vmatpush3.msra.mxu1 %v480_v45 }
  0xd1   : > { %544 = vmatprep.subr.mxu0 %v467_v42  ;;  %2002 = vmatprep.subr.mxu1 %v477_v47 }
  0xd2   : > { %545 = vmatpush1.msra.mxu0 %v466_v43  ;;  %2003 = vmatpush3.msra.mxu1 %v477_v47 }
  0xd3   : > { %579 = vmatmul.mubr.f32.vlgmr.msra.gmra.mxu0 %v3001_v14  ;;  %2013 = vmatprep.subr.mxu0 %v3004_v46 }
  0xd4   : > { %584 = vmatprep.mubr.f32.mxu0 %v2687_v0  ;;  %2014 = vmatpush3.msra.mxu0 %v3004_v46  ;;  %v3085_v0 = vld [vmem:[#allocation13 + $0x10] sm:$0xff] }
  0xd5   : > { %2004 = vmatprep.subr.mxu1 %v474_v49  ;;  %2015 = vmatprep.subr.mxu0 %v3011_v50 }
  0xd6   : > { %2005 = vmatpush3.msra.mxu1 %v474_v49  ;;  %2016 = vmatpush3.msra.mxu0 %v3011_v50 }
  0xd7   : > { %585 = vmatmul.mubr.f32.gmra.mxu0 %v460_v48  ;;  %2006 = vmatprep.subr.mxu1 %v471_v51 }
  0xd8   : > { %2017 = vmatprep.subr.mxu0 %v3014_v52  ;;  %2007 = vmatpush3.msra.mxu1 %v471_v51 }
  0xd9   : > { %2018 = vmatpush3.msra.mxu0 %v3014_v52  ;;  %2008 = vmatprep.subr.mxu1 %v468_v53 }
  0xda   : > { %2019 = vmatprep.subr.mxu0 %v3018_v54  ;;  %2009 = vmatpush3.msra.mxu1 %v468_v53 }
  0xdb   : > { %2020 = vmatpush3.msra.mxu0 %v3018_v54  ;;  %2011 = vmatmul.mubr.f32.vlgmr.msra.gmra.mxu1 %v460_v48 }
  0xdc   : > { %2048 = vmatprep.subr.mxu1 %v3004_v46  ;;  %2021 = vmatprep.subr.mxu0 %v3023_v55 }
  0xdd   : > { %2049 = vmatpush3.msra.mxu1 %v3004_v46  ;;  %2022 = vmatpush3.msra.mxu0 %v3023_v55 }
  0xde   : > { %2050 = vmatprep.subr.mxu1 %v3011_v50  ;;  %2023 = vmatprep.subr.mxu0 %v3027_v56 }
  0xdf   : > { %2051 = vmatpush3.msra.mxu1 %v3011_v50  ;;  %2024 = vmatpush3.msra.mxu0 %v3027_v56 }
  0xe0   : > { %2052 = vmatprep.subr.mxu1 %v3014_v52  ;;  %2025 = vmatprep.subr.mxu0 %v3033_v57 }
  0xe1   : > { %2053 = vmatpush3.msra.mxu1 %v3014_v52  ;;  %2026 = vmatpush3.msra.mxu0 %v3033_v57 }
  0xe2   : > { %2054 = vmatprep.subr.mxu1 %v3018_v54  ;;  %2027 = vmatprep.subr.mxu0 %v3039_v58 }
  0xe3   : > { %2055 = vmatpush3.msra.mxu1 %v3018_v54  ;;  %2028 = vmatpush3.msra.mxu0 %v3039_v58 }
  0xe4   : > { %2056 = vmatprep.subr.mxu1 %v3023_v55  ;;  %2029 = vmatprep.subr.mxu0 %v3056_v59 }
  0xe5   : > { %2057 = vmatpush3.msra.mxu1 %v3023_v55  ;;  %2030 = vmatpush3.msra.mxu0 %v3056_v59 }
  0xe6   : > { %2058 = vmatprep.subr.mxu1 %v3027_v56  ;;  %2031 = vmatprep.subr.mxu0 %v3061_v60 }
  0xe7   : > { %2059 = vmatpush3.msra.mxu1 %v3027_v56  ;;  %2032 = vmatpush3.msra.mxu0 %v3061_v60 }
  0xe8   : > { %2060 = vmatprep.subr.mxu1 %v3033_v57  ;;  %2033 = vmatprep.subr.mxu0 %v3067_v61 }
  0xe9   : > { %2061 = vmatpush3.msra.mxu1 %v3033_v57  ;;  %2034 = vmatpush3.msra.mxu0 %v3067_v61 }
  0xea   : > { %2062 = vmatprep.subr.mxu1 %v3039_v58  ;;  %2035 = vmatprep.subr.mxu0 %v3073_v62 }
  0xeb   : > { %2063 = vmatpush3.msra.mxu1 %v3039_v58  ;;  %2036 = vmatpush3.msra.mxu0 %v3073_v62 }
  0xec   : > { %2064 = vmatprep.subr.mxu1 %v3056_v59  ;;  %2037 = vmatprep.subr.mxu0 %v3079_v63 }
  0xed   : > { %2065 = vmatpush3.msra.mxu1 %v3056_v59  ;;  %2038 = vmatpush3.msra.mxu0 %v3079_v63 }
  0xee   : > { %2066 = vmatprep.subr.mxu1 %v3061_v60  ;;  %2039 = vmatprep.subr.mxu0 %v3085_v0 }
  0xef   : > { %2067 = vmatpush3.msra.mxu1 %v3061_v60  ;;  %2040 = vmatpush3.msra.mxu0 %v3085_v0 }
  0xf0   : > { %2068 = vmatprep.subr.mxu1 %v3067_v61  ;;  %2041 = vmatprep.subr.mxu0 %v3091_v1 }
  0xf1   : > { %2069 = vmatpush3.msra.mxu1 %v3067_v61  ;;  %2042 = vmatpush3.msra.mxu0 %v3091_v1 }
  0xf2   : > { %2070 = vmatprep.subr.mxu1 %v3073_v62  ;;  %2043 = vmatprep.subr.mxu0 %v3097_v2 }
  0xf3   : > { %2071 = vmatpush3.msra.mxu1 %v3073_v62  ;;  %2044 = vmatpush3.msra.mxu0 %v3097_v2 }
  0xf4   : > { %2072 = vmatprep.subr.mxu1 %v3079_v63  ;;  %2083 = vmatprep.subr.mxu0 %v3004_v46 }
  0xf5   : > { %2073 = vmatpush3.msra.mxu1 %v3079_v63 }
  0xf6   : > { %2074 = vmatprep.subr.mxu1 %v3085_v0 }
  0xf7   : > { %2075 = vmatpush3.msra.mxu1 %v3085_v0 }
  0xf8   : > { %2076 = vmatprep.subr.mxu1 %v3091_v1 }
  0xf9   : > { %2077 = vmatpush3.msra.mxu1 %v3091_v1 }
  0xfa   : > { %2078 = vmatprep.subr.mxu1 %v3097_v2 }
  0xfb   : > { %2079 = vmatpush3.msra.mxu1 %v3097_v2 }
  0xfc   : > { %2118 = vmatprep.subr.mxu1 %v3004_v46 }
 0x193   : > { %v580_v11 = vpop.f32.mrf.mxu0 }
 0x194   : > { %v670_v12 = vadd.f32 %v669_v8, %v580_v11 }
 0x195   : > { %v582_v14 = vpop.f32.mrf.mxu0 }
 0x196   : > { %v672_v15 = vadd.f32 %v670_v12, %v461_v10  ;;  %v678_v16 = vadd.f32 %v677_v9, %v582_v14 }
 0x197   : > { %v586_v18 = vpop.f32.mrf.mxu0 }
 0x198   : > { %v688_v19 = vmax.f32 %v672_v15, 0.0  ;;  %v680_v21 = vadd.f32 %v678_v16, %v461_v10  ;;  %v671_v22 = vadd.f32 %v669_v8, %v586_v18  ;;  %v3271_v8 = vld [vmem:[#allocation11 + $0x8] sm:$0xff] }
 0x199   : > { %v588_v23 = vpop.f32.mrf.mxu0 }
 0x19a   : > { %v690_v24 = vadd.f32 1e-06, %v688_v19  ;;  %v698_v25 = vmax.f32 %v680_v21, 0.0  ;;  %v673_v26 = vadd.f32 %v671_v22, %v462_v17  ;;  %v679_v27 = vadd.f32 %v677_v9, %v588_v23  ;;  %v3275_v9 = vld [vmem:[#allocation11] sm:$0xff] }
 0x19b   : > { %v2012_v48 = vpop.f32.mrf.mxu1 }
 0x19c   : > { %v696_v28 = vmul.f32 %v695_v20, %v690_v24  ;;  %v700_v29 = vadd.f32 1e-06, %v698_v25  ;;  %v689_v30 = vmax.f32 %v673_v26, 0.0  ;;  %v681_v31 = vadd.f32 %v679_v27, %v462_v17 }
 0x19e   : > { %v702_v32 = vmul.f32 %v700_v29, %v695_v20  ;;  %v691_v33 = vadd.f32 1e-06, %v689_v30  ;;  %v699_v34 = vmax.f32 %v681_v31, 0.0  ;;  %v736_v35 = vmul.f32 %v696_v28, %v696_v28 }
 0x1a0   : > { %v3123_v36 = vmul.f32 %v695_v20, %v691_v33  ;;  %v701_v37 = vadd.f32 1e-06, %v699_v34  ;;  %2045 = vmatprep.mubr.f32.mxu0 %v736_v35  ;;  %v813_v38 = vmul.f32 %v702_v32, %v702_v32  ;;  %v3125_v39 = vmul.f32 %v736_v35, %v696_v28  ;;  %v463_v33 = vld [vmem:[%s400_s21] sm:$0xff]  ;;  %v464_v34 = vld [vmem:[%s400_s21 + $0x8] sm:$0xff] }
 0x1a2   : > { %v737_v40 = vmul.f32 %v3123_v36, %v3123_v36  ;;  %v3129_v41 = vmul.f32 %v701_v37, %v695_v20  ;;  %2080 = vmatprep.mubr.f32.mxu1 %v813_v38  ;;  %v894_v42 = vmul.f32 %v3125_v39, %v3125_v39  ;;  %v3133_v43 = vmul.f32 %v813_v38, %v702_v32 }
 0x1a4   : > { %v3137_v44 = vmul.f32 %v3129_v41, %v3129_v41  ;;  %2046 = vmatmul.mubr.f32.vlgmr.msra.gmra.mxu0 %v737_v40  ;;  %v971_v45 = vmul.f32 %v3133_v43, %v3133_v43  ;;  %v3191_v47 = vmul.f32 %v737_v40, %v3123_v36 }
 0x1a5   : > { %2084 = vmatpush3.msra.mxu0 %v3004_v46  ;;  %2115 = vmatprep.mubr.f32.mxu0 %v894_v42 }
 0x1a6   : > { %2085 = vmatprep.subr.mxu0 %v3011_v50  ;;  %2081 = vmatmul.mubr.f32.vlgmr.msra.gmra.mxu1 %v3137_v44  ;;  %v895_v51 = vmul.f32 %v3191_v47, %v3191_v47 }
 0x1a7   : > { %2086 = vmatpush3.msra.mxu0 %v3011_v50  ;;  %2119 = vmatpush3.msra.mxu1 %v3004_v46  ;;  %v684_v46 = vsub.s32 2, %v3106_v4 }
 0x1a8   : > { %2087 = vmatprep.subr.mxu0 %v3014_v52  ;;  %2120 = vmatprep.subr.mxu1 %v3011_v50 }
 0x1a9   : > { %2150 = vmatprep.mubr.f32.mxu1 %v971_v45  ;;  %2088 = vmatpush3.msra.mxu0 %v3014_v52  ;;  %v685_v49 = vrot.slane %v3112_v6, %v684_v46 }
 0x1aa   : > { %2121 = vmatpush3.msra.mxu1 %v3011_v50  ;;  %2089 = vmatprep.subr.mxu0 %v3018_v54  ;;  %v3202_v50 = vmul.f32 %v3137_v44, %v3129_v41 }
 0x1ab   : > { %2122 = vmatprep.subr.mxu1 %v3014_v52  ;;  %2090 = vmatpush3.msra.mxu0 %v3018_v54  ;;  %v687_v53 = vadd.f32 %v2012_v48, %v685_v49 }
 0x1ac   : > { %2123 = vmatpush3.msra.mxu1 %v3014_v52  ;;  %2091 = vmatprep.subr.mxu0 %v3023_v55  ;;  %v657_v52 = vpop.f32.mrf.mxu1 }
 0x1ad   : > { %2124 = vmatprep.subr.mxu1 %v3018_v54  ;;  %2092 = vmatpush3.msra.mxu0 %v3023_v55 }
 0x1ae   : > { %2125 = vmatpush3.msra.mxu1 %v3018_v54  ;;  %2093 = vmatprep.subr.mxu0 %v3027_v56  ;;  %v972_v54 = vmul.f32 %v3202_v50, %v3202_v50 }
 0x1af   : > { %2126 = vmatprep.subr.mxu1 %v3023_v55  ;;  %2094 = vmatpush3.msra.mxu0 %v3027_v56 }
 0x1b0   : > { %2127 = vmatpush3.msra.mxu1 %v3023_v55  ;;  %2095 = vmatprep.subr.mxu0 %v3033_v57  ;;  %v686_v55 = vadd.f32 %v685_v49, %v657_v52 }
 0x1b1   : > { %2128 = vmatprep.subr.mxu1 %v3027_v56  ;;  %2096 = vmatpush3.msra.mxu0 %v3033_v57 }
 0x1b2   : > { %2129 = vmatpush3.msra.mxu1 %v3027_v56  ;;  %2097 = vmatprep.subr.mxu0 %v3039_v58  ;;  %v3217_v56 = vld [vmem:[#allocation11 + $0x78] sm:$0xff] }
 0x1b3   : > { %2130 = vmatprep.subr.mxu1 %v3033_v57  ;;  %2098 = vmatpush3.msra.mxu0 %v3039_v58 }
 0x1b4   : > { %2131 = vmatpush3.msra.mxu1 %v3033_v57  ;;  %2099 = vmatprep.subr.mxu0 %v3056_v59  ;;  %v3219_v57 = vld [vmem:[#allocation11 + $0x70] sm:$0xff] }
 0x1b5   : > { %2132 = vmatprep.subr.mxu1 %v3039_v58  ;;  %2100 = vmatpush3.msra.mxu0 %v3056_v59 }
 0x1b6   : > { %2133 = vmatpush3.msra.mxu1 %v3039_v58  ;;  %2101 = vmatprep.subr.mxu0 %v3061_v60  ;;  %v3223_v58 = vld [vmem:[#allocation11 + $0x68] sm:$0xff] }
 0x1b7   : > { %2134 = vmatprep.subr.mxu1 %v3056_v59  ;;  %2102 = vmatpush3.msra.mxu0 %v3061_v60 }
 0x1b8   : > { %2135 = vmatpush3.msra.mxu1 %v3056_v59  ;;  %2103 = vmatprep.subr.mxu0 %v3067_v61  ;;  %v3227_v59 = vld [vmem:[#allocation11 + $0x60] sm:$0xff] }
 0x1b9   : > { %2136 = vmatprep.subr.mxu1 %v3061_v60  ;;  %2104 = vmatpush3.msra.mxu0 %v3067_v61 }
 0x1ba   : > { %2137 = vmatpush3.msra.mxu1 %v3061_v60  ;;  %2105 = vmatprep.subr.mxu0 %v3073_v62  ;;  %v3231_v60 = vld [vmem:[#allocation11 + $0x58] sm:$0xff] }
 0x1bb   : > { %2138 = vmatprep.subr.mxu1 %v3067_v61  ;;  %2106 = vmatpush3.msra.mxu0 %v3073_v62 }
 0x1bc   : > { %2139 = vmatpush3.msra.mxu1 %v3067_v61  ;;  %2107 = vmatprep.subr.mxu0 %v3079_v63  ;;  %v3235_v61 = vld [vmem:[#allocation11 + $0x50] sm:$0xff] }
 0x1bd   : > { %2140 = vmatprep.subr.mxu1 %v3073_v62  ;;  %2108 = vmatpush3.msra.mxu0 %v3079_v63 }
 0x1be   : > { %2141 = vmatpush3.msra.mxu1 %v3073_v62  ;;  %2109 = vmatprep.subr.mxu0 %v3085_v0  ;;  %v3239_v62 = vld [vmem:[#allocation11 + $0x48] sm:$0xff] }
 0x1bf   : > { %2142 = vmatprep.subr.mxu1 %v3079_v63  ;;  %2110 = vmatpush3.msra.mxu0 %v3085_v0 }
 0x1c0   : > { %2143 = vmatpush3.msra.mxu1 %v3079_v63  ;;  %2111 = vmatprep.subr.mxu0 %v3091_v1  ;;  %v3243_v63 = vld [vmem:[#allocation11 + $0x40] sm:$0xff] }
 0x1c1   : > { %2144 = vmatprep.subr.mxu1 %v3085_v0  ;;  %2112 = vmatpush3.msra.mxu0 %v3091_v1 }
 0x1c2   : > { %2145 = vmatpush3.msra.mxu1 %v3085_v0  ;;  %2113 = vmatprep.subr.mxu0 %v3097_v2  ;;  %v3249_v0 = vld [vmem:[#allocation11 + $0x38] sm:$0xff] }
 0x1c3   : > { %2146 = vmatprep.subr.mxu1 %v3091_v1  ;;  %2114 = vmatpush3.msra.mxu0 %v3097_v2 }
 0x1c4   : > { %2147 = vmatpush3.msra.mxu1 %v3091_v1  ;;  %2116 = vmatmul.mubr.f32.vlgmr.msra.gmra.mxu0 %v895_v51  ;;  %v3251_v1 = vld [vmem:[#allocation11 + $0x30] sm:$0xff] }
 0x1c5   : > { %2148 = vmatprep.subr.mxu1 %v3097_v2  ;;  %2153 = vmatprep.subr.mxu0 %v3217_v56 }
 0x1c6   : > { %2149 = vmatpush3.msra.mxu1 %v3097_v2  ;;  %2154 = vmatpush3.msra.mxu0 %v3217_v56  ;;  %v3257_v2 = vld [vmem:[#allocation11 + $0x28] sm:$0xff] }
 0x1c7   : > { %2151 = vmatmul.mubr.f32.vlgmr.msra.gmra.mxu1 %v972_v54  ;;  %2188 = vmatprep.subr.mxu1 %v687_v53 }
 0x1c8   : > { %2189 = vmatpush3.msra.mxu1 %v687_v53  ;;  %2155 = vmatprep.subr.mxu0 %v3219_v57 }
 0x1c9   : > { %2190 = vmatprep.subr.mxu1 %v686_v55  ;;  %2156 = vmatpush3.msra.mxu0 %v3219_v57 }
 0x1ca   : > { %2191 = vmatpush3.msra.mxu1 %v686_v55  ;;  %2157 = vmatprep.subr.mxu0 %v3223_v58 }
 0x1cb   : > { %2158 = vmatpush3.msra.mxu0 %v3223_v58 }
 0x1cc   : > { %2159 = vmatprep.subr.mxu0 %v3227_v59 }
 0x1cd   : > { %2160 = vmatpush3.msra.mxu0 %v3227_v59 }
 0x1ce   : > { %2161 = vmatprep.subr.mxu0 %v3231_v60 }
 0x1cf   : > { %2162 = vmatpush3.msra.mxu0 %v3231_v60 }
 0x1d0   : > { %2163 = vmatprep.subr.mxu0 %v3235_v61 }
 0x1d1   : > { %2164 = vmatpush3.msra.mxu0 %v3235_v61 }
 0x1d2   : > { %2165 = vmatprep.subr.mxu0 %v3239_v62 }
 0x1d3   : > { %2166 = vmatpush3.msra.mxu0 %v3239_v62 }
 0x1d4   : > { %2167 = vmatprep.subr.mxu0 %v3243_v63 }
 0x1d5   : > { %2168 = vmatpush3.msra.mxu0 %v3243_v63 }
 0x1d6   : > { %2169 = vmatprep.subr.mxu0 %v3249_v0 }
 0x1d7   : > { %2170 = vmatpush3.msra.mxu0 %v3249_v0 }
 0x1d8   : > { %2171 = vmatprep.subr.mxu0 %v3251_v1 }
 0x1d9   : > { %2172 = vmatpush3.msra.mxu0 %v3251_v1 }
 0x1da   : > { %2173 = vmatprep.subr.mxu0 %v3257_v2 }
 0x1db   : > { %2174 = vmatpush3.msra.mxu0 %v3257_v2 }
 0x1dc   : > { %2175 = vmatprep.subr.mxu0 %v3261_v3 }
 0x1dd   : > { %2176 = vmatpush3.msra.mxu0 %v3261_v3 }
 0x1de   : > { %2177 = vmatprep.subr.mxu0 %v3265_v5 }
 0x1df   : > { %2178 = vmatpush3.msra.mxu0 %v3265_v5 }
 0x1e0   : > { %2179 = vmatprep.subr.mxu0 %v3267_v7 }
 0x1e1   : > { %2180 = vmatpush3.msra.mxu0 %v3267_v7 }
 0x1e2   : > { %2181 = vmatprep.subr.mxu0 %v3271_v8 }
 0x1e3   : > { %2182 = vmatpush3.msra.mxu0 %v3271_v8 }
 0x1e4   : > { %2183 = vmatprep.subr.mxu0 %v3275_v9 }
 0x1e5   : > { %2184 = vmatpush3.msra.mxu0 %v3275_v9 }
 0x264   : > { %v2047_v12 = vpop.f32.mrf.mxu0 }
 0x265   : > { %vm1057_vm4 = vcmp.eq.f32.partialorder %v2047_v12, inf  ;;  %v1060_v52 = vand.u32 2147483648, %v2047_v12  ;;  %vm1059_vm6 = vcmp.eq.f32.partialorder %v2047_v12, 0.0 }
 0x266   : > { %v2082_v10 = vpop.f32.mrf.mxu1  ;;  %v804_v16 = vpop.f32.mrf.mxu0 }
 0x267   : > { %2390 = vrsqrt.f32 %v2082_v10  ;;  %vm1077_vm0 = vcmp.eq.f32.partialorder %v2082_v10, inf  ;;  %v1080_v23 = vand.u32 2147483648, %v2082_v10  ;;  %vm1079_vm2 = vcmp.eq.f32.partialorder %v2082_v10, 0.0 }
 0x268   : > { %v881_v11 = vpop.f32.mrf.mxu1  ;;  %vm1050_vm5 = vcmp.eq.f32.partialorder %v804_v16, inf  ;;  %v1053_v53 = vand.u32 2147483648, %v804_v16  ;;  %vm1052_vm7 = vcmp.eq.f32.partialorder %v804_v16, 0.0 }
 0x269   : > { %2392 = vrsqrt.f32 %v881_v11  ;;  %vm1070_vm1 = vcmp.eq.f32.partialorder %v881_v11, inf  ;;  %v1073_v26 = vand.u32 2147483648, %v881_v11  ;;  %vm1072_vm3 = vcmp.eq.f32.partialorder %v881_v11, 0.0 }
 0x274   : > { %v2391_v15 = vpop.eup %2390 }
 0x275   : > { %v1076_v18 = vmul.f32 %v2391_v15, %v2082_v10 }
 0x276   : > { %v2393_v17 = vpop.eup %2392 }
 0x277   : > { %v1069_v20 = vmul.f32 %v2393_v17, %v881_v11  ;;  %v1078_v21 = vsel %vm1077_vm0, %v2082_v10, %v1076_v18 }
 0x278   : > { %v1081_v27 = vsel %vm1079_vm2, %v1080_v23, %v1078_v21 }
 0x279   : > { %v1071_v24 = vsel %vm1070_vm1, %v881_v11, %v1069_v20 }
 0x27a   : > { %v1074_v30 = vsel %vm1072_vm3, %v1073_v26, %v1071_v24 }
 0x284   : > { %v2117_v19 = vpop.f32.mrf.mxu0 }
 0x286   : > { %v962_v22 = vpop.f32.mrf.mxu0 }
 0x287   : > { %v2152_v13 = vpop.f32.mrf.mxu1 }
 0x288   : > { %2394 = vrsqrt.f32 %v2152_v13 }
 0x289   : > { %v1039_v14 = vpop.f32.mrf.mxu1 }
 0x28a   : > { %2396 = vrsqrt.f32 %v1039_v14 }
 0x28b   : > { %2398 = vrsqrt.f32 %v2047_v12 }
 0x28c   : > { %2400 = vrsqrt.f32 %v804_v16 }
 0x28d   : > { %2402 = vrsqrt.f32 %v2117_v19 }
 0x28e   : > { %2404 = vrsqrt.f32 %v962_v22 }
 0x295   : > { %v2395_v25 = vpop.eup %2394 }
 0x296   : > { %v1085_v28 = vmul.f32 %v2395_v25, %v1081_v27 }
 0x297   : > { %v2397_v29 = vpop.eup %2396 }
 0x298   : > { %v1084_v31 = vmul.f32 %v2397_v29, %v1074_v30  ;;  %v1087_v32 = vmul.f32 %v1085_v28, %v3202_v50  ;;  %v2399_v35 = vpop.eup %2398 }
 0x299   : > { %v2401_v37 = vpop.eup %2400  ;;  %v1056_v41 = vmul.f32 %v2399_v35, %v2047_v12  ;;  %v1514_v35 = vld [vmem:[#allocation10 + $0x68] sm:$0xff] }
 0x29a   : > { %v1086_v36 = vmul.f32 %v1084_v31, %v3133_v43  ;;  %v1089_v40 = vmul.f32 %v1087_v32, %v464_v34  ;;  %v1049_v42 = vmul.f32 %v2401_v37, %v804_v16  ;;  %v2403_v46 = vpop.eup %2402  ;;  %v1515_v34 = vld [vmem:[#allocation10 + $0x70] sm:$0xff]  ;;  %v1512_v37 = vld [vmem:[#allocation10 + $0x58] sm:$0xff] }
 0x29b   : > { %v1058_v48 = vsel %vm1057_vm4, %v2047_v12, %v1056_v41  ;;  %v2405_v51 = vpop.eup %2404  ;;  %v1509_v41 = vld [vmem:[#allocation10 + $0x40] sm:$0xff] }
 0x29c   : > { %v1088_v38 = vmul.f32 %v1086_v36, %v463_v33  ;;  %v1051_v50 = vsel %vm1050_vm5, %v804_v16, %v1049_v42  ;;  %v1061_v55 = vsel %vm1059_vm6, %v1060_v52, %v1058_v48  ;;  %v1516_v33 = vld [vmem:[#allocation10 + $0x78] sm:$0xff]  ;;  %v1513_v36 = vld [vmem:[#allocation10 + $0x60] sm:$0xff] }
 0x29d   : > { %v1054_v54 = vsel %vm1052_vm7, %v1053_v53, %v1051_v50  ;;  %v1065_v13 = vmul.f32 %v2403_v46, %v1061_v55  ;;  %2251 = vmatprep.subr.mxu0 %v1516_v33  ;;  %v1508_v42 = vld [vmem:[#allocation10 + $0x38] sm:$0xff]  ;;  %v1505_v46 = vld [vmem:[#allocation10 + $0x20] sm:$0xff] }
 0x29e   : > { %1182 = vxpose.xlu0.b32.start [1/2] (short) %v1088_v38, 128  ;;  %v1090_v44 = vadd.f32 %v1089_v40, %v1088_v38  ;;  %v1064_v11 = vmul.f32 %v2405_v51, %v1054_v54  ;;  %v1511_v38 = vld [vmem:[#allocation10 + $0x50] sm:$0xff]  ;;  %v1504_v48 = vld [vmem:[#allocation10 + $0x18] sm:$0xff] }
 0x29f   : > { %v3289_v18 = vmul.f32 %v1065_v13, %v3191_v47 }
 0x2a0   : > { %v1091_v45 = vrot.slane %v1090_v44, 4  ;;  %v1066_v15 = vmul.f32 %v1064_v11, %v3125_v39 }
 0x2a2   : > { %1183 = vxpose.xlu0.b32.end [2/2] (short) %v1089_v40, 128  ;;  %v1092_v49 = vadd.f32 %v1091_v45, %v1090_v44  ;;  %v1510_v40 = vld [vmem:[#allocation10 + $0x48] sm:$0xff]  ;;  %v1507_v44 = vld [vmem:[#allocation10 + $0x30] sm:$0xff] }
 0x2a3   : > { %v1506_v45 = vld [vmem:[#allocation10 + $0x28] sm:$0xff] }
 0x2a4   : > { %v1093_v43 = vrot.slane %v1092_v49, 2 }
 0x2a6   : > { %v1094_v10 = vadd.f32 %v1093_v43, %v1092_v49 }
 0x2a8   : > { %v1095_v14 = vrot.slane %v1094_v10, 1 }
 0x2aa   : > { %v1096_v17 = vadd.f32 %v1095_v14, %v1094_v10 }
 0x2ac   : > { %v1097_v19 = vmul.f32 %v1096_v17, %v1066_v15  ;;  %v1098_v20 = vmul.f32 %v1096_v17, %v3289_v18 }
 0x2ae   : > { %2185 = vmatprep.mubr.f32.mxu0 %v1097_v19 }
 0x2af   : > { %2186 = vmatmul.mubr.f32.vlgmr.msra.gmra.mxu0 %v1098_v20 }
 0x2b0   : > { %2252 = vmatpush3.msra.mxu0 %v1516_v33 }
 0x2b1   : > { %2253 = vmatprep.subr.mxu0 %v1515_v34 }
 0x2b2   : > { %2254 = vmatpush3.msra.mxu0 %v1515_v34 }
 0x2b3   : > { %2255 = vmatprep.subr.mxu0 %v1514_v35 }
 0x2b4   : > { %2256 = vmatpush3.msra.mxu0 %v1514_v35  ;;  %v1519_v35 = vsub.s32 4, %v3106_v4 }
 0x2b5   : > { %2257 = vmatprep.subr.mxu0 %v1513_v36 }
 0x2b6   : > { %2258 = vmatpush3.msra.mxu0 %v1513_v36  ;;  %v1520_v36 = vrot.slane %v3112_v6, %v1519_v35 }
 0x2b7   : > { %2259 = vmatprep.subr.mxu0 %v1512_v37 }
 0x2b8   : > { %2260 = vmatpush3.msra.mxu0 %v1512_v37 }
 0x2b9   : > { %2261 = vmatprep.subr.mxu0 %v1511_v38 }
 0x2ba   : > { %2262 = vmatpush3.msra.mxu0 %v1511_v38 }
 0x2bb   : > { %2263 = vmatprep.subr.mxu0 %v1510_v40 }
 0x2bc   : > { %2264 = vmatpush3.msra.mxu0 %v1510_v40 }
 0x2bd   : > { %2265 = vmatprep.subr.mxu0 %v1509_v41 }
 0x2be   : > { %2266 = vmatpush3.msra.mxu0 %v1509_v41 }
 0x2bf   : > { %2267 = vmatprep.subr.mxu0 %v1508_v42 }
 0x2c0   : > { %2268 = vmatpush3.msra.mxu0 %v1508_v42 }
 0x2c1   : > { %2269 = vmatprep.subr.mxu0 %v1507_v44 }
 0x2c2   : > { %2270 = vmatpush3.msra.mxu0 %v1507_v44 }
 0x2c3   : > { %2271 = vmatprep.subr.mxu0 %v1506_v45 }
 0x2c4   : > { %2272 = vmatpush3.msra.mxu0 %v1506_v45 }
 0x2c5   : > { %2273 = vmatprep.subr.mxu0 %v1505_v46 }
 0x2c6   : > { %2274 = vmatpush3.msra.mxu0 %v1505_v46 }
 0x2c7   : > { %2275 = vmatprep.subr.mxu0 %v1504_v48 }
 0x2c8   : > { %2276 = vmatpush3.msra.mxu0 %v1504_v48 }
 0x31a   : > { %v1198_v12 = vpop.trf.xlu0 }
 0x31b   : > { %2192 = vmatprep.mubr.msk.f32.mxu1 %vm1214_vm8, %v1198_v12 }
 0x31e   : > { %v1199_v16 = vpop.trf.xlu0 }
 0x31f   : > { %2193 = vmatmul.mubr.msk.f32.vlgmr.msra.gmra.mxu1 %vm1214_vm8, %v1199_v16 }
 0x322   : > { %v1200_v21 = vpop.trf.xlu0 }
 0x323   : > { %2195 = vmatprep.mubr.msk.f32.mxu1 %vm1214_vm8, %v1200_v21 }
 0x326   : > { %v1201_v39 = vpop.trf.xlu0 }
 0x327   : > { %2196 = vmatmul.mubr.msk.f32.gmra.mxu1 %vm1214_vm8, %v1201_v39 }
 0x32a   : > { %v1202_v47 = vpop.trf.xlu0 }
 0x32b   : > { %2198 = vmatprep.mubr.msk.f32.mxu1 %vm1214_vm8, %v1202_v47 }
 0x32e   : > { %v1203_v22 = vpop.trf.xlu0 }
 0x32f   : > { %2199 = vmatmul.mubr.msk.f32.gmra.mxu1 %vm1214_vm8, %v1203_v22 }
 0x332   : > { %v1204_v23 = vpop.trf.xlu0 }
 0x333   : > { %2201 = vmatprep.mubr.msk.f32.mxu1 %vm1214_vm8, %v1204_v23 }
 0x336   : > { %v1205_v24 = vpop.trf.xlu0 }
 0x337   : > { %2202 = vmatmul.mubr.msk.f32.gmra.mxu1 %vm1214_vm8, %v1205_v24 }
 0x33a   : > { %v1206_v25 = vpop.trf.xlu0 }
 0x33b   : > { %2204 = vmatprep.mubr.msk.f32.mxu1 %vm1214_vm8, %v1206_v25 }
 0x33e   : > { %v1207_v26 = vpop.trf.xlu0 }
 0x33f   : > { %2205 = vmatmul.mubr.msk.f32.gmra.mxu1 %vm1214_vm8, %v1207_v26 }
 0x342   : > { %v1208_v27 = vpop.trf.xlu0 }
 0x343   : > { %2207 = vmatprep.mubr.msk.f32.mxu1 %vm1214_vm8, %v1208_v27 }
 0x346   : > { %v1209_v28 = vpop.trf.xlu0 }
 0x347   : > { %2208 = vmatmul.mubr.msk.f32.gmra.mxu1 %vm1214_vm8, %v1209_v28 }
 0x34a   : > { %v1210_v29 = vpop.trf.xlu0 }
 0x34b   : > { %2210 = vmatprep.mubr.msk.f32.mxu1 %vm1214_vm8, %v1210_v29 }
 0x34e   : > { %v1211_v30 = vpop.trf.xlu0 }
 0x34f   : > { %2211 = vmatmul.mubr.msk.f32.gmra.mxu1 %vm1214_vm8, %v1211_v30 }
 0x352   : > { %v1212_v31 = vpop.trf.xlu0 }
 0x353   : > { %2213 = vmatprep.mubr.msk.f32.mxu1 %vm1214_vm8, %v1212_v31 }
 0x356   : > { %v1213_v32 = vpop.trf.xlu0 }
 0x357   : > { %2214 = vmatmul.mubr.msk.f32.gmra.mxu1 %vm1214_vm8, %v1213_v32 }
 0x358   : > { %2248 = vmatprep.mubr.f32.mxu1 %v1066_v15 }
 0x3df   : > { %v2194_v49 = vpop.f32.mrf.mxu1 }
 0x3e1   : > { %v1329_v50 = vpop.f32.mrf.mxu1 }
 0x3e7   : > { %v2197_v51 = vpop.f32.mrf.mxu1 }
 0x3e9   : > { %v1339_v52 = vpop.f32.mrf.mxu1 }
 0x3ef   : > { %v2200_v53 = vpop.f32.mrf.mxu1 }
 0x3f1   : > { %v1349_v43 = vpop.f32.mrf.mxu1 }
 0x3f7   : > { %v2203_v54 = vpop.f32.mrf.mxu1 }
 0x3f9   : > { %v1359_v55 = vpop.f32.mrf.mxu1 }
 0x3ff   : > { %v2206_v10 = vpop.f32.mrf.mxu1 }
 0x401   : > { %v1369_v11 = vpop.f32.mrf.mxu1 }
 0x407   : > { %v2209_v13 = vpop.f32.mrf.mxu1 }
 0x408   : > { %v1419_v47 = vmul.f32 %v2209_v13, %v3231_v60  ;;  %v1413_v60 = vmul.f32 %v2200_v53, %v3257_v2  ;;  %v1503_v2 = vld [vmem:[#allocation10 + $0x10] sm:$0xff] }
 0x409   : > { %v1379_v14 = vpop.f32.mrf.mxu1  ;;  %2277 = vmatprep.subr.mxu0 %v1503_v2 }
 0x40a   : > { %v1418_v22 = vmul.f32 %v1379_v14, %v3235_v61  ;;  %v1412_v61 = vmul.f32 %v1349_v43, %v3261_v3  ;;  %2278 = vmatpush3.msra.mxu0 %v1503_v2  ;;  %v1502_v3 = vld [vmem:[#allocation10 + $0x8] sm:$0xff] }
 0x40b   : > { %2279 = vmatprep.subr.mxu0 %v1502_v3 }
 0x40c   : > { %2280 = vmatpush3.msra.mxu0 %v1502_v3 }
 0x40f   : > { %v2212_v15 = vpop.f32.mrf.mxu1 }
 0x410   : > { %v1421_v21 = vmul.f32 %v2212_v15, %v3223_v58  ;;  %v1415_v58 = vmul.f32 %v2203_v54, %v3249_v0  ;;  %v1409_v0 = vmul.f32 %v2194_v49, %v3271_v8 }
 0x411   : > { %v1389_v17 = vpop.f32.mrf.mxu1 }
 0x412   : > { %v1420_v39 = vmul.f32 %v1389_v17, %v3227_v59  ;;  %v1414_v59 = vmul.f32 %v1359_v55, %v3251_v1  ;;  %v1408_v1 = vmul.f32 %v1329_v50, %v3275_v9 }
 0x417   : > { %v2215_v19 = vpop.f32.mrf.mxu1 }
 0x418   : > { %v1423_v20 = vmul.f32 %v2215_v19, %v3217_v56  ;;  %v1417_v56 = vmul.f32 %v2206_v10, %v3239_v62  ;;  %v1411_v62 = vmul.f32 %v2197_v51, %v3265_v5  ;;  %v1501_v5 = vld [vmem:[#allocation10] sm:$0xff] }
 0x419   : > { %v1399_v12 = vpop.f32.mrf.mxu1  ;;  %2281 = vmatprep.subr.mxu0 %v1501_v5 }
 0x41a   : > { %v1422_v16 = vmul.f32 %v1399_v12, %v3219_v57  ;;  %2216 = vmatprep.subr.mxu1 %v1423_v20  ;;  %v1416_v57 = vmul.f32 %v1369_v11, %v3243_v63  ;;  %v1410_v63 = vmul.f32 %v1339_v52, %v3267_v7  ;;  %2282 = vmatpush3.msra.mxu0 %v1501_v5  ;;  %v2187_v7 = vpop.f32.mrf.mxu0 }
 0x41b   : > { %2217 = vmatpush3.msra.mxu1 %v1423_v20  ;;  %v1171_v24 = vadd.f32 1e-06, %v2187_v7 }
 0x41c   : > { %2218 = vmatprep.subr.mxu1 %v1422_v16  ;;  %v1165_v8 = vpop.f32.mrf.mxu0 }
 0x41d   : > { %2219 = vmatpush3.msra.mxu1 %v1422_v16  ;;  %v1166_v23 = vadd.f32 1e-06, %v1165_v8 }
 0x41e   : > { %2220 = vmatprep.subr.mxu1 %v1421_v21 }
 0x41f   : > { %2221 = vmatpush3.msra.mxu1 %v1421_v21  ;;  %2406 = vrcp.f32 %v1166_v23 }
 0x420   : > { %2222 = vmatprep.subr.mxu1 %v1420_v39  ;;  %2408 = vrcp.f32 %v1171_v24 }
 0x421   : > { %2223 = vmatpush3.msra.mxu1 %v1420_v39 }
 0x422   : > { %2224 = vmatprep.subr.mxu1 %v1419_v47 }
 0x423   : > { %2225 = vmatpush3.msra.mxu1 %v1419_v47 }
 0x424   : > { %2226 = vmatprep.subr.mxu1 %v1418_v22 }
 0x425   : > { %2227 = vmatpush3.msra.mxu1 %v1418_v22 }
 0x426   : > { %2228 = vmatprep.subr.mxu1 %v1417_v56 }
 0x427   : > { %2229 = vmatpush3.msra.mxu1 %v1417_v56 }
 0x428   : > { %2230 = vmatprep.subr.mxu1 %v1416_v57 }
 0x429   : > { %2231 = vmatpush3.msra.mxu1 %v1416_v57 }
 0x42a   : > { %2232 = vmatprep.subr.mxu1 %v1415_v58 }
 0x42b   : > { %2233 = vmatpush3.msra.mxu1 %v1415_v58 }
 0x42c   : > { %2234 = vmatprep.subr.mxu1 %v1414_v59  ;;  %v2407_v9 = vpop.eup %2406 }
 0x42d   : > { %2235 = vmatpush3.msra.mxu1 %v1414_v59  ;;  %v2409_v25 = vpop.eup %2408  ;;  %v1176_v26 = vmul.f32 %v2407_v9, %v1166_v23 }
 0x42e   : > { %2236 = vmatprep.subr.mxu1 %v1413_v60 }
 0x42f   : > { %2237 = vmatpush3.msra.mxu1 %v1413_v60  ;;  %v1178_v27 = vsub.f32 2.0, %v1176_v26 }
 0x430   : > { %2238 = vmatprep.subr.mxu1 %v1412_v61 }
 0x431   : > { %2239 = vmatpush3.msra.mxu1 %v1412_v61  ;;  %v1180_v30 = vmul.f32 %v2407_v9, %v1178_v27 }
 0x432   : > { %2240 = vmatprep.subr.mxu1 %v1411_v62 }
 0x433   : > { %2241 = vmatpush3.msra.mxu1 %v1411_v62 }
 0x434   : > { %2242 = vmatprep.subr.mxu1 %v1410_v63 }
 0x435   : > { %2243 = vmatpush3.msra.mxu1 %v1410_v63 }
 0x436   : > { %2244 = vmatprep.subr.mxu1 %v1409_v0 }
 0x437   : > { %2245 = vmatpush3.msra.mxu1 %v1409_v0 }
 0x438   : > { %2246 = vmatprep.subr.mxu1 %v1408_v1 }
 0x439   : > { %2247 = vmatpush3.msra.mxu1 %v1408_v1 }
 0x43a   : > { %2249 = vmatmul.mubr.f32.vlgmr.msra.gmra.mxu1 %v3289_v18  ;;  %v1177_v18 = vmul.f32 %v2409_v25, %v1171_v24 }
 0x43c   : > { %v1179_v28 = vsub.f32 2.0, %v1177_v18 }
 0x43e   : > { %v1181_v31 = vmul.f32 %v2409_v25, %v1179_v28 }
 0x4fa   : > { %v2250_v29 = vpop.f32.mrf.mxu1 }
 0x4fb   : > { %v1500_v34 = vmul.f32 %v2250_v29, %v1181_v31 }
 0x4fc   : > { %v1490_v32 = vpop.f32.mrf.mxu1 }
 0x4fd   : > { %v1499_v33 = vmul.f32 %v1490_v32, %v1180_v30 }
 0x4ff   : > { %2283 = vmatprep.mubr.f32.mxu0 %v1499_v33 }
 0x500   : > { %2284 = vmatmul.mubr.f32.vlgmr.msra.gmra.mxu0 %v1500_v34 }
 0x5c0   : > { %v2285_v37 = vpop.f32.mrf.mxu0 }
 0x5c1   : > { %v1593_v38 = vadd.f32 %v2285_v37, %v1520_v36 }
 0x5c2   : > { %v1587_v40 = vpop.f32.mrf.mxu0 }
 0x5c3   : > { %1597 = vst [vmem:[%s458_s16 + $0x8] sm:$0xff] %v1593_v38  ;;  %v1588_v4 = vadd.f32 %v1587_v40, %v1520_v36 }
 0x5c5   : > { %1596 = vst [vmem:[%s458_s16] sm:$0xff] %v1588_v4 }
 0x5c6   : > { %2611 = shalt.err (!%p2608_p12)
}
 0x5c7   : > { %s2612_s12 = scalar_lea.hbm %s3334_s10, 256  ;;  %s2616_s6 = scalar_lea.hbm %s3385_s8, 512 }
 0x5c8   : > { %p2613_p1 = scmp.ne.s32.totalorder %s3334_s10, %s2612_s12  ;;  %p2617_p2 = scmp.lt.s32.totalorder %s3334_s10, %s3385_s8 }
 0x5c9   : > { %p2618_p3 = scmp.lt.s32.totalorder %s2616_s6, %s2612_s12 }
 0x5ca   : > { %p2614_p5 = pnand %p2613_p1, %p3432_p9 }
 0x5cb   : > { %p2619_p6 = por %p2618_p3, %p2617_p2 }
 0x5cc   : > { %p2615_p10 = pneg %p2614_p5 }
 0x5ce   : > { %p2620_p7 = pnand %p2619_p6, %p2615_p10 }
 0x5d0   : > { %2623 = shalt.err (!%p2620_p7)
}
 0x5d1   : > { %s2689_s21 = smov 128   ;;  %s2690_s11 = smov 8  }
 0x5d2   : > { %2308 = dma.vmem_to_hbm [thread:$0]  (%p3432_p9), %s3329_s17, 256, %s3334_s10, %s1599_s18, %s2689_s21, %s2689_s21, %s2690_s11  }
 0x5d3 PF: > { %s3433_s22 = sld [smem:[#allocation21_spill]]  ;;  %s1627_s14 = sand.u32 1, %s2662_s27  }
 0x5d4   : > { %s3434_s16 = sld [smem:[#allocation20_spill]]  ;;  %s1628_s19 = scalar_lea.sflag [#allocation4], %s1627_s14 }
 0x5d9   : > { %p3435_p4 = scmp.ne.s32.totalorder %s3433_s22, 0 }
 0x5da   : > { %p3436_p8 = scmp.ge.s32.totalorder %s3434_s16, 2 }
 0x5dc   : > { %p2334_p11 = pnand %p3436_p8, %p3435_p4 }
 0x5de   : > { %p2335_p13 = pneg %p2334_p11 }
 0x5e0   : > { %2657 = dma.done.wait (%p2335_p13), %s1628_s19, 256  }
 0x5e1   : > { %2659 = vsyncadd (%p2335_p13), %s1628_s19, 4294967040  ;;  %s3437_s30 = sld [smem:[#allocation22_spill]]  ;;  %s3439_s27 = smov %s2666_s28 }
 0x5e2   : > { %s3438_s26 = sld [smem:[#allocation23_spill]]  ;;  %s3440_s28 = smov %s2670_s29 }
 0x5e7   : > { %p26_p0 = scmp.ge.s32.totalorder %s3437_s30, 4  }
 0x5e8   : > { %s3441_s29 = smov %s3438_s26 }
 0x5e9   :  { %28 = sbr.rel (!%p26_p0) target bundleno = 13 (0xd), region = 137 }
 0x5ee   :  { %1633 = vsyncpa [#allocation3], 1 }
 0x5ef   :  { %1635 = vsyncpa [#allocation3 + $0x1], 1 }
 0x5f0   :  { %1636 = vsyncpa [#allocation6], 1 }
 0x5f1   :  { %1638 = vsyncpa [#allocation6 + $0x1], 1 }
 0x5f2   :  { %1639 = vsyncpa [#allocation9], 1 }
 0x5f3   :  { %1640 = vsyncpa [#allocation12], 1 }
 0x5f4   :  { %1641 = vsyncpa [#allocation4], 1 }
 0x5f5   :  { %1643 = vsyncpa [#allocation4 + $0x1], 1 }

</bundles_post_ra>
